<compile_context>
chip_gen: v6e
topology: v6e:2x2x1
jax: 0.10.0
libtpu: 0.0.40
codegen_flags: <defaults>
</compile_context>

<pallas_src>
import functools

import jax
import jax.numpy as jnp
from jax.experimental import pallas as pl
from jax.experimental.pallas import tpu as pltpu


# ----------------------------- fused kernel ---------------------------------

def _sign_fused_kernel(*refs, num_branches, num_layers, in_dim):
    """Fused SIGN forward for one row tile.

    Ref layout (inputs, in order), followed by the single output ref:
      packed feats: 1 ref, (TM, (hops+1)*in_dim) bf16
      per branch:   num_layers weight refs bf16, then (1,) alpha ref in SMEM
      sign alpha:   (1,) ref in SMEM
      projection:   num_layers weight refs bf16, then (1,) alpha ref in SMEM
      output:       (TM, out_dim)
    """
    idx = 0
    feat_ref = refs[idx]
    idx += 1

    branches = []
    for _ in range(num_branches):
        ws = refs[idx:idx + num_layers]
        idx += num_layers
        a = refs[idx]
        idx += 1
        branches.append((ws, a))

    sign_a_ref = refs[idx]
    idx += 1
    proj_ws = refs[idx:idx + num_layers]
    idx += num_layers
    proj_a_ref = refs[idx]
    idx += 1
    o_ref = refs[idx]

    def ffn(x_bf16, w_refs, a_ref):
        n = len(w_refs)
        y = None
        for i, w_ref in enumerate(w_refs):
            # bf16 MXU inputs, f32 accumulation.
            y = jnp.dot(x_bf16, w_ref[...], preferred_element_type=jnp.float32)
            if i < n - 1:
                a = a_ref[0]
                y = jnp.where(y > 0, y, a * y)          # PReLU in f32
                x_bf16 = y.astype(jnp.bfloat16)
        return y

    feat = feat_ref[...]                                 # (TM, B*in_dim) bf16
    sa = sign_a_ref[0]

    # Inception branches; SIGN-level PReLU applied per branch (elementwise ==
    # applying it after the concat), results concatenated in bf16.
    hs = []
    for b, (ws, a) in enumerate(branches):
        x = feat[:, b * in_dim:(b + 1) * in_dim]         # static lane slice
        h = ffn(x, ws, a)                                # (TM, hidden) f32
        h = jnp.where(h > 0, h, sa * h)
        hs.append(h.astype(jnp.bfloat16))
    h_cat = jnp.concatenate(hs, axis=-1)                 # (TM, B*hidden) bf16

    # Projection FFN, write final logits only.
    out = ffn(h_cat, proj_ws, proj_a_ref)
    o_ref[...] = out.astype(o_ref.dtype)


# ------------------------------ wrapper --------------------------------------

def pack_feats(feats):
    """Pack the (hops+1) hop feature matrices into one (N, B*in_dim) bf16 array.

    Do this once per dataset (or store features bf16 directly) so the kernel's
    dominant HBM stream is half-width and lane-dense.
    """
    return jnp.concatenate([f.astype(jnp.bfloat16) for f in feats], axis=-1)


def _pick_tm(n_rows):
    """Large tiles amortize per-step overhead (~0.35 us), but keep >= ~8 grid
    steps so v7x's two TensorCores both get work and the pipeline overlaps."""
    if n_rows <= 128:
        return n_rows
    tm = 1024
    while tm > 128 and pl.cdiv(n_rows, tm) < 8:
        tm //= 2
    return tm


def sign_forward(packed_feats, params, *, tm=None, out_dtype=jnp.float32):
    """Run the fused SIGN forward.

    packed_feats: (N, (num_hops+1)*in_dim) bf16 array (see pack_feats).
    params: dict with "inception" (list of (ws, alpha)), "project" (ws, alpha),
            and "prelu_alpha" ((1,) f32).  ws are bf16 (in, out) matrices
            (already transposed from PyTorch's (out, in) layout).
    """
    N, total_in = packed_feats.shape
    inception = params["inception"]
    num_branches = len(inception)
    in_dim = total_in // num_branches
    proj_ws, proj_a = params["project"]
    sign_a = params["prelu_alpha"]
    num_layers = len(proj_ws)
    out_dim = proj_ws[-1].shape[1]

    if tm is None:
        tm = _pick_tm(N)
    grid = (pl.cdiv(N, tm),)                 # pick tm | N to avoid padded tail work

    inputs = []
    in_specs = []
    all_weights = []

    # Packed hop features: one row-tiled, lane-dense bf16 stream.
    inputs.append(packed_feats)
    in_specs.append(pl.BlockSpec((tm, total_in), lambda i: (i, 0)))

    # Branch weights (bf16, constant block -> fetched once, VMEM-resident)
    # + per-branch PReLU slope (SMEM scalar).
    for ws, a in inception:
        for w in ws:
            K, M = w.shape
            inputs.append(w)
            in_specs.append(pl.BlockSpec((K, M), lambda i: (0, 0)))
            all_weights.append(w)
        inputs.append(a)
        in_specs.append(pl.BlockSpec(memory_space=pltpu.SMEM))

    # SIGN-level PReLU slope.
    inputs.append(sign_a)
    in_specs.append(pl.BlockSpec(memory_space=pltpu.SMEM))

    # Projection weights + slope.
    for w in proj_ws:
        K, M = w.shape
        inputs.append(w)
        in_specs.append(pl.BlockSpec((K, M), lambda i: (0, 0)))
        all_weights.append(w)
    inputs.append(proj_a)
    in_specs.append(pl.BlockSpec(memory_space=pltpu.SMEM))

    out_spec = pl.BlockSpec((tm, out_dim), lambda i: (i, 0))

    out_itemsize = jnp.dtype(out_dtype).itemsize
    weight_bytes = sum(w.size * w.dtype.itemsize for w in all_weights)
    flops = sum(2 * N * w.shape[0] * w.shape[1] for w in all_weights)
    bytes_accessed = (packed_feats.size * packed_feats.dtype.itemsize
                      + weight_bytes
                      + N * out_dim * out_itemsize)

    # Size VMEM from actual need; cap at 48 MiB so it fits v7x's 64 MiB/TC
    # with headroom for compiler scratch (v5e/v6e have 128 MiB, unaffected).
    need = (2 * tm * total_in * packed_feats.dtype.itemsize   # dbl-buffered feats
            + 2 * tm * out_dim * out_itemsize                 # dbl-buffered out
            + 2 * weight_bytes)                               # resident weights
    vmem_limit = int(min(48 * 1024 * 1024, max(16 * 1024 * 1024, 2 * need)))

    kernel = functools.partial(_sign_fused_kernel,
                               num_branches=num_branches,
                               num_layers=num_layers,
                               in_dim=in_dim)

    return pl.pallas_call(
        kernel,
        out_shape=jax.ShapeDtypeStruct((N, out_dim), out_dtype),
        grid=grid,
        in_specs=in_specs,
        out_specs=out_spec,
        compiler_params=pltpu.CompilerParams(
            dimension_semantics=("parallel",),   # megacore on v7x, no-op v5e/v6e
            vmem_limit_bytes=vmem_limit,
        ),
        cost_estimate=pl.CostEstimate(flops=flops, transcendentals=0,
                                      bytes_accessed=bytes_accessed),
    )(*inputs)


# ------------------------------ init / reference -----------------------------

def init_feedforward(key, in_dim, hidden_dim, out_dim, num_layers):
    dims = ([(in_dim, out_dim)] if num_layers == 1 else
            [(in_dim, hidden_dim)] +
            [(hidden_dim, hidden_dim)] * (num_layers - 2) +
            [(hidden_dim, out_dim)])
    keys = jax.random.split(key, len(dims))
    # Weights stored already transposed to (in, out) and pre-cast to bf16 (MXU dtype).
    ws = [(0.1 * jax.random.normal(k, d, dtype=jnp.float32)).astype(jnp.bfloat16)
          for k, d in zip(keys, dims)]
    alpha = jnp.full((1,), 0.25, dtype=jnp.float32)   # nn.PReLU() default init
    return ws, alpha


def init_sign(key, in_dim, hidden_dim, out_dim, num_hops, num_layers):
    keys = jax.random.split(key, num_hops + 2)
    inception = [init_feedforward(keys[i], in_dim, hidden_dim, hidden_dim, num_layers)
                 for i in range(num_hops + 1)]
    project = init_feedforward(keys[-1], (num_hops + 1) * hidden_dim,
                               hidden_dim, out_dim, num_layers)
    return {
        "inception": inception,
        "project": project,
        "prelu_alpha": jnp.full((1,), 0.25, dtype=jnp.float32),
    }


def _ffn_ref(x_bf16, ws, a):
    # Same numerics as the kernel: bf16 operands, f32 accumulation, f32 PReLU.
    y = None
    for i, w in enumerate(ws):
        y = jnp.dot(x_bf16, w.astype(jnp.bfloat16), preferred_element_type=jnp.float32)
        if i < len(ws) - 1:
            y = jnp.where(y > 0, y, a[0] * y)
            x_bf16 = y.astype(jnp.bfloat16)
    return y


def sign_ref(feats, params):
    sa = params["prelu_alpha"][0]
    hs = []
    for f, (ws, a) in zip(feats, params["inception"]):
        h = _ffn_ref(f.astype(jnp.bfloat16), ws, a)
        h = jnp.where(h > 0, h, sa * h)              # SIGN PReLU (per branch == post-concat)
        hs.append(h.astype(jnp.bfloat16))
    h = jnp.concatenate(hs, axis=-1)
    ws, pa = params["project"]
    return _ffn_ref(h, ws, pa)


# --------------------------------- main ---------------------------------------

if __name__ == "__main__":
    # Lane-dense dims (multiples of 128), small N split into two row tiles.
    N, in_dim, hidden_dim, out_dim = 256, 128, 128, 128
    num_hops, num_layers = 2, 2

    key = jax.random.PRNGKey(0)
    k_params, k_feats = jax.random.split(key)
    params = init_sign(k_params, in_dim, hidden_dim, out_dim, num_hops, num_layers)

    feat_keys = jax.random.split(k_feats, num_hops + 1)
    feats = [jax.random.normal(k, (N, in_dim), dtype=jnp.float32) for k in feat_keys]

    packed = pack_feats(feats)                       # (N, 3*128) bf16, packed once
    out = sign_forward(packed, params)               # tm auto -> 128, grid=(2,)
    out = jax.block_until_ready(out)

    ref = sign_ref(feats, params)
    assert out.shape == (N, out_dim), out.shape
    assert jnp.allclose(out, ref, atol=1e-2, rtol=1e-2), "mismatch vs. JAX reference"

    print("KERNEL_OK")
</pallas_src>

<mosaic_0001>
module attributes {stable_mosaic.version = 11 : i64} {
  func.func @_sign_fused_kernel(%arg0: i32, %arg1: memref<128x384xbf16, #tpu.memory_space<vmem>>, %arg2: memref<128x128xbf16, #tpu.memory_space<vmem>>, %arg3: memref<128x128xbf16, #tpu.memory_space<vmem>>, %arg4: memref<1xf32, #tpu.memory_space<smem>>, %arg5: memref<128x128xbf16, #tpu.memory_space<vmem>>, %arg6: memref<128x128xbf16, #tpu.memory_space<vmem>>, %arg7: memref<1xf32, #tpu.memory_space<smem>>, %arg8: memref<128x128xbf16, #tpu.memory_space<vmem>>, %arg9: memref<128x128xbf16, #tpu.memory_space<vmem>>, %arg10: memref<1xf32, #tpu.memory_space<smem>>, %arg11: memref<1xf32, #tpu.memory_space<smem>>, %arg12: memref<384x128xbf16, #tpu.memory_space<vmem>>, %arg13: memref<128x128xbf16, #tpu.memory_space<vmem>>, %arg14: memref<1xf32, #tpu.memory_space<smem>>, %arg15: memref<128x128xf32, #tpu.memory_space<vmem>>) attributes {dimension_semantics = [#tpu.dimension_semantics<parallel>], iteration_bounds = array<i64: 2>, scalar_prefetch = 0 : i64, scratch_operands = 0 : i64, tpu.core_type = #tpu.core_type<tc>, window_params = [{transform_indices = @transform_0, window_bounds = array<i64: 128, 384>}, {pipeline_mode = #tpu.pipeline_mode<synchronous>, transform_indices = @transform_1, window_bounds = array<i64: 128, 128>}, {pipeline_mode = #tpu.pipeline_mode<synchronous>, transform_indices = @transform_2, window_bounds = array<i64: 128, 128>}, {transform_indices = @transform_3, window_bounds = array<i64: 1>}, {pipeline_mode = #tpu.pipeline_mode<synchronous>, transform_indices = @transform_4, window_bounds = array<i64: 128, 128>}, {pipeline_mode = #tpu.pipeline_mode<synchronous>, transform_indices = @transform_5, window_bounds = array<i64: 128, 128>}, {transform_indices = @transform_6, window_bounds = array<i64: 1>}, {pipeline_mode = #tpu.pipeline_mode<synchronous>, transform_indices = @transform_7, window_bounds = array<i64: 128, 128>}, {pipeline_mode = #tpu.pipeline_mode<synchronous>, transform_indices = @transform_8, window_bounds = array<i64: 128, 128>}, {transform_indices = @transform_9, window_bounds = array<i64: 1>}, {transform_indices = @transform_10, window_bounds = array<i64: 1>}, {pipeline_mode = #tpu.pipeline_mode<synchronous>, transform_indices = @transform_11, window_bounds = array<i64: 384, 128>}, {pipeline_mode = #tpu.pipeline_mode<synchronous>, transform_indices = @transform_12, window_bounds = array<i64: 128, 128>}, {transform_indices = @transform_13, window_bounds = array<i64: 1>}, {transform_indices = @transform_14, window_bounds = array<i64: 128, 128>}]} {
    %c0 = arith.constant 0 : index
    %c0_0 = arith.constant 0 : index
    %0 = vector.load %arg1[%c0, %c0_0] : memref<128x384xbf16, #tpu.memory_space<vmem>>, vector<128x384xbf16>
    %c0_1 = arith.constant 0 : index
    %1 = memref.load %arg11[%c0_1] : memref<1xf32, #tpu.memory_space<smem>>
    %2 = vector.extract_strided_slice %0 {offsets = [0, 0], sizes = [128, 128], strides = [1, 1]} : vector<128x384xbf16> to vector<128x128xbf16>
    %c0_2 = arith.constant 0 : index
    %c0_3 = arith.constant 0 : index
    %3 = vector.load %arg2[%c0_2, %c0_3] : memref<128x128xbf16, #tpu.memory_space<vmem>>, vector<128x128xbf16>
    %cst = arith.constant dense<0.000000e+00> : vector<128x128xf32>
    %4 = tpu.matmul %2, %3, %cst {dimension_numbers = #tpu.dot_dimension_numbers<[1], [0], [0], [1], [0, 0, 1, 1], [], []>} : vector<128x128xbf16>, vector<128x128xbf16>, vector<128x128xf32> -> vector<128x128xf32>
    %c0_4 = arith.constant 0 : index
    %5 = memref.load %arg4[%c0_4] : memref<1xf32, #tpu.memory_space<smem>>
    %cst_5 = arith.constant 0.000000e+00 : f32
    %6 = vector.broadcast %cst_5 : f32 to vector<128x128xf32>
    %7 = arith.cmpf ogt, %4, %6 : vector<128x128xf32>
    %8 = vector.broadcast %5 : f32 to vector<128x128xf32>
    %9 = arith.mulf %8, %4 : vector<128x128xf32>
    %10 = arith.select %7, %4, %9 : vector<128x128xi1>, vector<128x128xf32>
    %11 = arith.truncf %10 : vector<128x128xf32> to vector<128x128xbf16>
    %c0_6 = arith.constant 0 : index
    %c0_7 = arith.constant 0 : index
    %12 = vector.load %arg3[%c0_6, %c0_7] : memref<128x128xbf16, #tpu.memory_space<vmem>>, vector<128x128xbf16>
    %cst_8 = arith.constant dense<0.000000e+00> : vector<128x128xf32>
    %13 = tpu.matmul %11, %12, %cst_8 {dimension_numbers = #tpu.dot_dimension_numbers<[1], [0], [0], [1], [0, 0, 1, 1], [], []>} : vector<128x128xbf16>, vector<128x128xbf16>, vector<128x128xf32> -> vector<128x128xf32>
    %cst_9 = arith.constant 0.000000e+00 : f32
    %14 = vector.broadcast %cst_9 : f32 to vector<128x128xf32>
    %15 = arith.cmpf ogt, %13, %14 : vector<128x128xf32>
    %16 = vector.broadcast %1 : f32 to vector<128x128xf32>
    %17 = arith.mulf %16, %13 : vector<128x128xf32>
    %18 = arith.select %15, %13, %17 : vector<128x128xi1>, vector<128x128xf32>
    %19 = arith.truncf %18 : vector<128x128xf32> to vector<128x128xbf16>
    %20 = vector.extract_strided_slice %0 {offsets = [0, 128], sizes = [128, 128], strides = [1, 1]} : vector<128x384xbf16> to vector<128x128xbf16>
    %c0_10 = arith.constant 0 : index
    %c0_11 = arith.constant 0 : index
    %21 = vector.load %arg5[%c0_10, %c0_11] : memref<128x128xbf16, #tpu.memory_space<vmem>>, vector<128x128xbf16>
    %cst_12 = arith.constant dense<0.000000e+00> : vector<128x128xf32>
    %22 = tpu.matmul %20, %21, %cst_12 {dimension_numbers = #tpu.dot_dimension_numbers<[1], [0], [0], [1], [0, 0, 1, 1], [], []>} : vector<128x128xbf16>, vector<128x128xbf16>, vector<128x128xf32> -> vector<128x128xf32>
    %c0_13 = arith.constant 0 : index
    %23 = memref.load %arg7[%c0_13] : memref<1xf32, #tpu.memory_space<smem>>
    %cst_14 = arith.constant 0.000000e+00 : f32
    %24 = vector.broadcast %cst_14 : f32 to vector<128x128xf32>
    %25 = arith.cmpf ogt, %22, %24 : vector<128x128xf32>
    %26 = vector.broadcast %23 : f32 to vector<128x128xf32>
    %27 = arith.mulf %26, %22 : vector<128x128xf32>
    %28 = arith.select %25, %22, %27 : vector<128x128xi1>, vector<128x128xf32>
    %29 = arith.truncf %28 : vector<128x128xf32> to vector<128x128xbf16>
    %c0_15 = arith.constant 0 : index
    %c0_16 = arith.constant 0 : index
    %30 = vector.load %arg6[%c0_15, %c0_16] : memref<128x128xbf16, #tpu.memory_space<vmem>>, vector<128x128xbf16>
    %cst_17 = arith.constant dense<0.000000e+00> : vector<128x128xf32>
    %31 = tpu.matmul %29, %30, %cst_17 {dimension_numbers = #tpu.dot_dimension_numbers<[1], [0], [0], [1], [0, 0, 1, 1], [], []>} : vector<128x128xbf16>, vector<128x128xbf16>, vector<128x128xf32> -> vector<128x128xf32>
    %cst_18 = arith.constant 0.000000e+00 : f32
    %32 = vector.broadcast %cst_18 : f32 to vector<128x128xf32>
    %33 = arith.cmpf ogt, %31, %32 : vector<128x128xf32>
    %34 = vector.broadcast %1 : f32 to vector<128x128xf32>
    %35 = arith.mulf %34, %31 : vector<128x128xf32>
    %36 = arith.select %33, %31, %35 : vector<128x128xi1>, vector<128x128xf32>
    %37 = arith.truncf %36 : vector<128x128xf32> to vector<128x128xbf16>
    %38 = vector.extract_strided_slice %0 {offsets = [0, 256], sizes = [128, 128], strides = [1, 1]} : vector<128x384xbf16> to vector<128x128xbf16>
    %c0_19 = arith.constant 0 : index
    %c0_20 = arith.constant 0 : index
    %39 = vector.load %arg8[%c0_19, %c0_20] : memref<128x128xbf16, #tpu.memory_space<vmem>>, vector<128x128xbf16>
    %cst_21 = arith.constant dense<0.000000e+00> : vector<128x128xf32>
    %40 = tpu.matmul %38, %39, %cst_21 {dimension_numbers = #tpu.dot_dimension_numbers<[1], [0], [0], [1], [0, 0, 1, 1], [], []>} : vector<128x128xbf16>, vector<128x128xbf16>, vector<128x128xf32> -> vector<128x128xf32>
    %c0_22 = arith.constant 0 : index
    %41 = memref.load %arg10[%c0_22] : memref<1xf32, #tpu.memory_space<smem>>
    %cst_23 = arith.constant 0.000000e+00 : f32
    %42 = vector.broadcast %cst_23 : f32 to vector<128x128xf32>
    %43 = arith.cmpf ogt, %40, %42 : vector<128x128xf32>
    %44 = vector.broadcast %41 : f32 to vector<128x128xf32>
    %45 = arith.mulf %44, %40 : vector<128x128xf32>
    %46 = arith.select %43, %40, %45 : vector<128x128xi1>, vector<128x128xf32>
    %47 = arith.truncf %46 : vector<128x128xf32> to vector<128x128xbf16>
    %c0_24 = arith.constant 0 : index
    %c0_25 = arith.constant 0 : index
    %48 = vector.load %arg9[%c0_24, %c0_25] : memref<128x128xbf16, #tpu.memory_space<vmem>>, vector<128x128xbf16>
    %cst_26 = arith.constant dense<0.000000e+00> : vector<128x128xf32>
    %49 = tpu.matmul %47, %48, %cst_26 {dimension_numbers = #tpu.dot_dimension_numbers<[1], [0], [0], [1], [0, 0, 1, 1], [], []>} : vector<128x128xbf16>, vector<128x128xbf16>, vector<128x128xf32> -> vector<128x128xf32>
    %cst_27 = arith.constant 0.000000e+00 : f32
    %50 = vector.broadcast %cst_27 : f32 to vector<128x128xf32>
    %51 = arith.cmpf ogt, %49, %50 : vector<128x128xf32>
    %52 = vector.broadcast %1 : f32 to vector<128x128xf32>
    %53 = arith.mulf %52, %49 : vector<128x128xf32>
    %54 = arith.select %51, %49, %53 : vector<128x128xi1>, vector<128x128xf32>
    %55 = arith.truncf %54 : vector<128x128xf32> to vector<128x128xbf16>
    %56 = tpu.concatenate %19, %37, %55 in 1 : vector<128x128xbf16>, vector<128x128xbf16>, vector<128x128xbf16> -> vector<128x384xbf16>
    %c0_28 = arith.constant 0 : index
    %c0_29 = arith.constant 0 : index
    %57 = vector.load %arg12[%c0_28, %c0_29] : memref<384x128xbf16, #tpu.memory_space<vmem>>, vector<384x128xbf16>
    %cst_30 = arith.constant dense<0.000000e+00> : vector<128x128xf32>
    %58 = tpu.matmul %56, %57, %cst_30 {dimension_numbers = #tpu.dot_dimension_numbers<[1], [0], [0], [1], [0, 0, 1, 1], [], []>} : vector<128x384xbf16>, vector<384x128xbf16>, vector<128x128xf32> -> vector<128x128xf32>
    %c0_31 = arith.constant 0 : index
    %59 = memref.load %arg14[%c0_31] : memref<1xf32, #tpu.memory_space<smem>>
    %cst_32 = arith.constant 0.000000e+00 : f32
    %60 = vector.broadcast %cst_32 : f32 to vector<128x128xf32>
    %61 = arith.cmpf ogt, %58, %60 : vector<128x128xf32>
    %62 = vector.broadcast %59 : f32 to vector<128x128xf32>
    %63 = arith.mulf %62, %58 : vector<128x128xf32>
    %64 = arith.select %61, %58, %63 : vector<128x128xi1>, vector<128x128xf32>
    %65 = arith.truncf %64 : vector<128x128xf32> to vector<128x128xbf16>
    %c0_33 = arith.constant 0 : index
    %c0_34 = arith.constant 0 : index
    %66 = vector.load %arg13[%c0_33, %c0_34] : memref<128x128xbf16, #tpu.memory_space<vmem>>, vector<128x128xbf16>
    %cst_35 = arith.constant dense<0.000000e+00> : vector<128x128xf32>
    %67 = tpu.matmul %65, %66, %cst_35 {dimension_numbers = #tpu.dot_dimension_numbers<[1], [0], [0], [1], [0, 0, 1, 1], [], []>} : vector<128x128xbf16>, vector<128x128xbf16>, vector<128x128xf32> -> vector<128x128xf32>
    %c0_36 = arith.constant 0 : index
    %c0_37 = arith.constant 0 : index
    %68 = vector.load %arg15[%c0_36, %c0_37] : memref<128x128xf32, #tpu.memory_space<vmem>>, vector<128x128xf32>
    tpu.vector_store %arg15[%c0_36, %c0_37], %67 {strides = array<i32>} : memref<128x128xf32, #tpu.memory_space<vmem>>, vector<128x128xf32>,
    return
  }
  func.func @transform_0(%arg0: i32) -> (i32, i32) {
    %c0_i32 = arith.constant 0 : i32
    %c0_i32_0 = arith.constant 0 : i32
    return %arg0, %c0_i32 : i32, i32
  }
  func.func @transform_1(%arg0: i32) -> (i32, i32) {
    %c0_i32 = arith.constant 0 : i32
    %c0_i32_0 = arith.constant 0 : i32
    %c0_i32_1 = arith.constant 0 : i32
    return %c0_i32, %c0_i32_0 : i32, i32
  }
  func.func @transform_2(%arg0: i32) -> (i32, i32) {
    %c0_i32 = arith.constant 0 : i32
    %c0_i32_0 = arith.constant 0 : i32
    %c0_i32_1 = arith.constant 0 : i32
    return %c0_i32, %c0_i32_0 : i32, i32
  }
  func.func @transform_3(%arg0: i32) -> i32 {
    %c0_i32 = arith.constant 0 : i32
    %c0_i32_0 = arith.constant 0 : i32
    return %c0_i32 : i32
  }
  func.func @transform_4(%arg0: i32) -> (i32, i32) {
    %c0_i32 = arith.constant 0 : i32
    %c0_i32_0 = arith.constant 0 : i32
    %c0_i32_1 = arith.constant 0 : i32
    return %c0_i32, %c0_i32_0 : i32, i32
  }
  func.func @transform_5(%arg0: i32) -> (i32, i32) {
    %c0_i32 = arith.constant 0 : i32
    %c0_i32_0 = arith.constant 0 : i32
    %c0_i32_1 = arith.constant 0 : i32
    return %c0_i32, %c0_i32_0 : i32, i32
  }
  func.func @transform_6(%arg0: i32) -> i32 {
    %c0_i32 = arith.constant 0 : i32
    %c0_i32_0 = arith.constant 0 : i32
    return %c0_i32 : i32
  }
  func.func @transform_7(%arg0: i32) -> (i32, i32) {
    %c0_i32 = arith.constant 0 : i32
    %c0_i32_0 = arith.constant 0 : i32
    %c0_i32_1 = arith.constant 0 : i32
    return %c0_i32, %c0_i32_0 : i32, i32
  }
  func.func @transform_8(%arg0: i32) -> (i32, i32) {
    %c0_i32 = arith.constant 0 : i32
    %c0_i32_0 = arith.constant 0 : i32
    %c0_i32_1 = arith.constant 0 : i32
    return %c0_i32, %c0_i32_0 : i32, i32
  }
  func.func @transform_9(%arg0: i32) -> i32 {
    %c0_i32 = arith.constant 0 : i32
    %c0_i32_0 = arith.constant 0 : i32
    return %c0_i32 : i32
  }
  func.func @transform_10(%arg0: i32) -> i32 {
    %c0_i32 = arith.constant 0 : i32
    %c0_i32_0 = arith.constant 0 : i32
    return %c0_i32 : i32
  }
  func.func @transform_11(%arg0: i32) -> (i32, i32) {
    %c0_i32 = arith.constant 0 : i32
    %c0_i32_0 = arith.constant 0 : i32
    %c0_i32_1 = arith.constant 0 : i32
    return %c0_i32, %c0_i32_0 : i32, i32
  }
  func.func @transform_12(%arg0: i32) -> (i32, i32) {
    %c0_i32 = arith.constant 0 : i32
    %c0_i32_0 = arith.constant 0 : i32
    %c0_i32_1 = arith.constant 0 : i32
    return %c0_i32, %c0_i32_0 : i32, i32
  }
  func.func @transform_13(%arg0: i32) -> i32 {
    %c0_i32 = arith.constant 0 : i32
    %c0_i32_0 = arith.constant 0 : i32
    return %c0_i32 : i32
  }
  func.func @transform_14(%arg0: i32) -> (i32, i32) {
    %c0_i32 = arith.constant 0 : i32
    %c0_i32_0 = arith.constant 0 : i32
    return %arg0, %c0_i32 : i32, i32
  }
}

</mosaic_0001>

<bundles_post_ra>
// kernel: tpu_custom_call.1
= control target key start
LH: loop header
LB: loop body
LE: loop exit
PB: predicated region body
PF: predicated region fallthrough
CT: control target
= control target key end

     0   :  { %s4680_s0 = inlined_call_operand.hbm [shape: bf16[256,384], index: 0, kind: input, shape index: {}]   ;;  %s4681_s1 = inlined_call_operand.hbm [shape: bf16[128,128], index: 1, kind: input, shape index: {}]   ;;  %s4682_s2 = inlined_call_operand.hbm [shape: bf16[128,128], index: 2, kind: input, shape index: {}]   ;;  %s4683_s3 = inlined_call_operand.<no memory space> [shape: f32[1], index: 3, kind: input, shape index: {}]   ;;  %s4684_s4 = inlined_call_operand.hbm [shape: bf16[128,128], index: 4, kind: input, shape index: {}]   ;;  %s4685_s5 = inlined_call_operand.hbm [shape: bf16[128,128], index: 5, kind: input, shape index: {}]   ;;  %s4686_s6 = inlined_call_operand.<no memory space> [shape: f32[1], index: 6, kind: input, shape index: {}]   ;;  %s4687_s7 = inlined_call_operand.hbm [shape: bf16[128,128], index: 7, kind: input, shape index: {}]   ;;  %s4688_s8 = inlined_call_operand.hbm [shape: bf16[128,128], index: 8, kind: input, shape index: {}]   ;;  %s4689_s9 = inlined_call_operand.<no memory space> [shape: f32[1], index: 9, kind: input, shape index: {}]   ;;  %s4690_s11 = inlined_call_operand.hbm [shape: bf16[384,128], index: 11, kind: input, shape index: {}]   ;;  %s4691_s12 = inlined_call_operand.hbm [shape: bf16[128,128], index: 12, kind: input, shape index: {}]   ;;  %s4692_s14 = inlined_call_operand.hbm [shape: f32[256,128], index: 14, kind: output, shape index: {}]   ;;  %s4693_s10 = inlined_call_operand.<no memory space> [shape: f32[1], index: 10, kind: input, shape index: {}]   ;;  %s4694_s13 = inlined_call_operand.<no memory space> [shape: f32[1], index: 13, kind: input, shape index: {}]  }
   0x1   :  { %4699 = sst [smem:[#allocation29_spill]] %s4681_s1 }
   0x2   :  { %4700 = sst [smem:[#allocation30_spill]] %s4682_s2 }
   0x3   :  { %4701 = sst [smem:[#allocation31_spill]] %s4684_s4 }
   0x4   :  { %19 = sst [smem:[#allocation2]] %s4683_s3 }
   0x5   :  { %20 = sst [smem:[#allocation3]] %s4686_s6 }
   0x6   :  { %21 = sst [smem:[#allocation4]] %s4689_s9 }
   0x7   :  { %22 = sst [smem:[#allocation5]] %s4693_s10 }
   0x8   :  { %23 = sst [smem:[#allocation6]] %s4694_s13 }
   0x9   :  { %24 = vsyncpa [#allocation8], 0 }
   0xa   :  { %26 = vsyncpa [#allocation8 + $0x1], 0 }
   0xb   :  { %27 = vsyncpa [#allocation11], 0 }
   0xc   :  { %28 = vsyncpa [#allocation14], 0 }
   0xd   :  { %29 = vsyncpa [#allocation17], 0 }
   0xe   :  { %30 = vsyncpa [#allocation20], 0 }
   0xf   :  { %31 = vsyncpa [#allocation9], 0 }
  0x10   :  { %33 = vsyncpa [#allocation9 + $0x1], 0  ;;  %s4119_s3 = smov 0   ;;  %s4121_s6 = smov 0  }
  0x11   :  { %s4123_s9 = smov 0   ;;  %s4125_s23 = smov 0  }
  0x12 LB: > { %s4013_s10 = smov [#allocation10]   ;;  %s4140_s24 = sadd.s32 4294967295, %s4011_s23   ;;  %s4011_s23 = sphi %s4125_s23, %s4728_s23   ;;  %s4007_s9 = sphi %s4123_s9, %s4727_s9   ;;  %s4003_s6 = sphi %s4121_s6, %s4726_s6   ;;  %s3999_s3 = sphi %s4119_s3, %s4725_s3  }
  0x13   : > { %s381_s13 = sshll.u32 %s4013_s10, 4  ;;  %p2866_p0 = scmp.ge.s32.totalorder %s4011_s23, 1  ;;  %s382_s13 = int_to_ptr.vmem [resolvable:$true] %s381_s13 }
  0x14   : > { %p4695_p1 = scmp.eq.s32.totalorder %s4140_s24, 0  ;;  %p369_p2 = scmp.lt.s32.totalorder %s4011_s23, 3 }
  0x15   : > { %s4014_s26 = smov [#allocation13]   ;;  %s4015_s29 = smov [#allocation16]  }
  0x16   : > { %p4145_p3 = pnand %p2866_p0, %p369_p2  ;;  %s410_s27 = sshll.u32 %s4014_s26, 4  ;;  %s4158_s27 = int_to_ptr.vmem [resolvable:$true] %s410_s27 }
  0x17   : > { %s439_s30 = sshll.u32 %s4015_s29, 4  ;;  %s3706_s16 = scalar_lea.vmem %s382_s13, 1024  ;;  %s4160_s30 = int_to_ptr.vmem [resolvable:$true] %s439_s30 }
  0x18   : > { %s4702_s25 = scalar_select %p4145_p3, 1, 0 }
  0x19   : > { %p3486_p5 = pneg %p4145_p3  ;;  %p3707_p8 = scmp.ne.s32.totalorder %s382_s13, %s3706_s16 }
  0x1a   : > { %p3714_p11 = scmp.lt.s32.totalorder %s382_s13, %s382_s13  ;;  %p3715_p12 = scmp.lt.s32.totalorder %s3706_s16, %s3706_s16 }
  0x1b   : > { %p4154_p6 = pnand %p3486_p5, %p4695_p1 }
  0x1c   : > { %p3716_p13 = por %p3715_p12, %p3714_p11 }
  0x1d   : > { %p4164_p7 = pneg %p4154_p6 }
  0x1f   : > { %p3709_p9 = pnand %p3707_p8, %p4164_p7 }
  0x21   : > { %p3710_p10 = pneg %p3709_p9 }
  0x23   : > { %p3717_p0 = pnand %p3716_p13, %p3710_p10 }
  0x25   : > { %3720 = shalt.err (!%p3717_p0)
}
  0x26   : > { %s4016_s17 = smov 64   ;;  %s4017_s18 = smov 4  }
  0x27   : > { %s4705_s1 = sld [smem:[#allocation29_spill]]  ;;  %s3732_s21 = scalar_lea.vmem %s4158_s27, 1024 }
  0x28   : > { %p3733_p2 = scmp.ne.s32.totalorder %s4158_s27, %s3732_s21  ;;  %p3740_p9 = scmp.lt.s32.totalorder %s4158_s27, %s4158_s27 }
  0x29   : > { %p3741_p10 = scmp.lt.s32.totalorder %s3732_s21, %s3732_s21 }
  0x2a   : > { %p3735_p5 = pnand %p3733_p2, %p4164_p7 }
  0x2b   : > { %p3742_p11 = por %p3741_p10, %p3740_p9 }
  0x2c   : > { %p3736_p8 = pneg %p3735_p5 }
  0x2d   : > { %3489 = dma.hbm_to_vmem [thread:$0]  (!%p4154_p6), %s4705_s1, 1024, %s382_s13, [#allocation11], %s4016_s17, %s4016_s17, %s4017_s18  }
  0x2e   : > { %p3743_p12 = pnand %p3742_p11, %p3736_p8 }
  0x30   : > { %3746 = shalt.err (!%p3743_p12)
}
  0x31   : > { %s4706_s4 = sld [smem:[#allocation31_spill]]  ;;  %s3758_s13 = scalar_lea.vmem %s4160_s30, 1024 }
  0x32   : > { %p3759_p13 = scmp.ne.s32.totalorder %s4160_s30, %s3758_s13  ;;  %p3766_p5 = scmp.lt.s32.totalorder %s4160_s30, %s4160_s30 }
  0x33   : > { %p3767_p8 = scmp.lt.s32.totalorder %s3758_s13, %s3758_s13 }
  0x34   : > { %p3761_p0 = pnand %p3759_p13, %p4164_p7 }
  0x35   : > { %p3768_p9 = por %p3767_p8, %p3766_p5 }
  0x36   : > { %p3762_p2 = pneg %p3761_p0 }
  0x37   : > { %3495 = dma.hbm_to_vmem [thread:$0]  (!%p4154_p6), %s4706_s4, 1024, %s4158_s27, [#allocation14], %s4016_s17, %s4016_s17, %s4017_s18  }
  0x38   : > { %p3769_p10 = pnand %p3768_p9, %p3762_p2 }
  0x3a   : > { %3772 = shalt.err (!%p3769_p10)
}
  0x3b   : > { %3501 = dma.hbm_to_vmem [thread:$0]  (!%p4154_p6), %s4687_s7, 1024, %s4160_s30, [#allocation17], %s4016_s17, %s4016_s17, %s4017_s18  }
  0x3c   : > { %s4018_s27 = smov [#allocation19]   ;;  %s4019_s19 = smov [#allocation12]  }
  0x3d   : > { %s471_s16 = sshll.u32 %s4018_s27, 4  ;;  %s394_s20 = sshll.u32 %s4019_s19, 4  ;;  %s472_s16 = int_to_ptr.vmem [resolvable:$true] %s471_s16  ;;  %s395_s20 = int_to_ptr.vmem [resolvable:$true] %s394_s20 }
  0x3e   : > { %s3784_s21 = scalar_lea.vmem %s472_s16, 3072  ;;  %p3792_p0 = scmp.lt.s32.totalorder %s472_s16, %s472_s16 }
  0x3f   : > { %p3785_p11 = scmp.ne.s32.totalorder %s472_s16, %s3784_s21  ;;  %p3793_p2 = scmp.lt.s32.totalorder %s3784_s21, %s3784_s21 }
  0x41   : > { %p3787_p12 = pnand %p3785_p11, %p4164_p7  ;;  %p3794_p5 = por %p3793_p2, %p3792_p0 }
  0x43   : > { %p3788_p13 = pneg %p3787_p12 }
  0x45   : > { %p3795_p8 = pnand %p3794_p5, %p3788_p13 }
  0x47   : > { %3798 = shalt.err (!%p3795_p8)
}
  0x48   : > { %3507 = dma.hbm_to_vmem [thread:$0]  (!%p4154_p6), %s4690_s11, 3072, %s472_s16, [#allocation20], %s4016_s17, %s4016_s17, %s4017_s18  }
  0x49   : > { %s3810_s10 = scalar_lea.vmem %s395_s20, 1024  ;;  %p3818_p12 = scmp.lt.s32.totalorder %s395_s20, %s395_s20 }
  0x4a   : > { %p3811_p9 = scmp.ne.s32.totalorder %s395_s20, %s3810_s10  ;;  %p3819_p0 = scmp.lt.s32.totalorder %s3810_s10, %s3810_s10 }
  0x4c   : > { %p3813_p10 = pnand %p3811_p9, %p4164_p7  ;;  %p3820_p13 = por %p3819_p0, %p3818_p12 }
  0x4e   : > { %p3814_p11 = pneg %p3813_p10 }
  0x50   : > { %p3821_p2 = pnand %p3820_p13, %p3814_p11 }
  0x52   : > { %3824 = shalt.err (!%p3821_p2)
}
  0x53   : > { %s4707_s2 = sld [smem:[#allocation30_spill]]  ;;  %s4020_s29 = smov [#allocation15]  }
  0x54   : > { %s423_s27 = sshll.u32 %s4020_s29, 4  ;;  %s4021_s16 = smov [#allocation18]   ;;  %s424_s27 = int_to_ptr.vmem [resolvable:$true] %s423_s27 }
  0x55   : > { %s452_s19 = sshll.u32 %s4021_s16, 4  ;;  %s3836_s21 = scalar_lea.vmem %s424_s27, 1024  ;;  %s453_s19 = int_to_ptr.vmem [resolvable:$true] %s452_s19 }
  0x56   : > { %p3837_p5 = scmp.ne.s32.totalorder %s424_s27, %s3836_s21  ;;  %p3844_p10 = scmp.lt.s32.totalorder %s424_s27, %s424_s27 }
  0x57   : > { %p3845_p11 = scmp.lt.s32.totalorder %s3836_s21, %s3836_s21 }
  0x58   : > { %p3839_p8 = pnand %p3837_p5, %p4164_p7 }
  0x59   : > { %3492 = dma.hbm_to_vmem [thread:$0]  (!%p4154_p6), %s4707_s2, 1024, %s395_s20, [#allocation11], %s4016_s17, %s4016_s17, %s4017_s18  }
  0x5a   : > { %p3840_p9 = pneg %p3839_p8  ;;  %p3846_p12 = por %p3845_p11, %p3844_p10 }
  0x5c   : > { %p3847_p0 = pnand %p3846_p12, %p3840_p9 }
  0x5e   : > { %3850 = shalt.err (!%p3847_p0)
}
  0x5f   : > { %3498 = dma.hbm_to_vmem [thread:$0]  (!%p4154_p6), %s4685_s5, 1024, %s424_s27, [#allocation14], %s4016_s17, %s4016_s17, %s4017_s18  }
  0x60   : > { %s3862_s22 = scalar_lea.vmem %s453_s19, 1024  ;;  %p3870_p8 = scmp.lt.s32.totalorder %s453_s19, %s453_s19 }
  0x61   : > { %p3863_p13 = scmp.ne.s32.totalorder %s453_s19, %s3862_s22  ;;  %p3871_p10 = scmp.lt.s32.totalorder %s3862_s22, %s3862_s22 }
  0x63   : > { %p3865_p2 = pnand %p3863_p13, %p4164_p7  ;;  %p3872_p9 = por %p3871_p10, %p3870_p8 }
  0x65   : > { %p3866_p5 = pneg %p3865_p2 }
  0x67   : > { %p3873_p11 = pnand %p3872_p9, %p3866_p5 }
  0x69   : > { %3876 = shalt.err (!%p3873_p11)
}
  0x6a   : > { %3504 = dma.hbm_to_vmem [thread:$0]  (!%p4154_p6), %s4688_s8, 1024, %s453_s19, [#allocation17], %s4016_s17, %s4016_s17, %s4017_s18  }
  0x6b   : > { %s4022_s26 = smov [#allocation21]  }
  0x6c   : > { %s484_s29 = sshll.u32 %s4022_s26, 4  ;;  %s485_s29 = int_to_ptr.vmem [resolvable:$true] %s484_s29 }
  0x6d   : > { %s3888_s27 = scalar_lea.vmem %s485_s29, 1024  ;;  %p3896_p2 = scmp.lt.s32.totalorder %s485_s29, %s485_s29 }
  0x6e   : > { %p3889_p12 = scmp.ne.s32.totalorder %s485_s29, %s3888_s27  ;;  %p3897_p5 = scmp.lt.s32.totalorder %s3888_s27, %s3888_s27 }
  0x70   : > { %p3891_p0 = pnand %p3889_p12, %p4164_p7  ;;  %p3898_p8 = por %p3897_p5, %p3896_p2 }
  0x72   : > { %p3892_p13 = pneg %p3891_p0 }
  0x74   : > { %p3899_p10 = pnand %p3898_p8, %p3892_p13 }
  0x76   : > { %3902 = shalt.err (!%p3899_p10)
}
  0x77   : > { %3510 = dma.hbm_to_vmem [thread:$0]  (!%p4154_p6), %s4691_s12, 1024, %s485_s29, [#allocation20], %s4016_s17, %s4016_s17, %s4017_s18  }
  0x78   : > { %s2865_s28 = sadd.s32 4294967294, %s4011_s23   ;;  %s4260_s15 = sadd.s32 1, %s4011_s23  }
  0x79   : > { %s43_s21 = ssub.s32 %s4011_s23, %s4260_s15  ;;  %s46_s20 = sadd.s32 1, %s4007_s9 }
  0x7a   : > { %p44_p7 = scmp.eq.s32.totalorder %s43_s21, 0  ;;  %p53_p9 = scmp.ne.s32.totalorder %s4007_s9, %s4003_s6 }
  0x7b   : > { %p54_p11 = scmp.eq.s32.totalorder %s4011_s23, 0  ;;  %p59_p12 = scmp.ne.s32.totalorder %s4003_s6, %s3999_s3 }
  0x7c   : > { %s4271_s30 = scalar_select %p44_p7, %s4007_s9, %s46_s20  }
  0x7d   : > { %p55_p0 = por %p54_p11, %p53_p9  ;;  %p4275_p13 = por %p4695_p1, %p59_p12 }
  0x7e   : > { %p356_p6 = scmp.eq.s32.totalorder %s4140_s24, 1  ;;  %p362_p2 = scmp.eq.s32.totalorder %s2865_s28, 1 }
  0x7f   : > { %s4708_s22 = scalar_select %p4275_p13, 1, 0 }
  0x80   : > { %p3527_p5 = scmp.lt.s32.totalorder %s4011_s23, 2  ;;  %s501_s17 = sand.u32 1, %s4007_s9  }
  0x81   : > { %p4282_p8 = por %p356_p6, %p53_p9  ;;  %p4286_p10 = por %p362_p2, %p59_p12 }
  0x82   : > { %s3447_s13 = smul.u32 192, %s501_s17  ;;  %p4291_p7 = pnand %p3527_p5, %p55_p0 }
  0x83   : > { %s4709_s18 = scalar_select %p4282_p8, 1, 0 }
  0x84   : > { %s4710_s10 = scalar_select %p4286_p10, 1, 0 }
  0x85   : > { %s3448_s26 = smul.u32 3072, %s4011_s23  ;;  %s505_s28 = scalar_lea.vmem [#allocation7], %s3447_s13 }
  0x86   : > { %s513_s21 = sshll.u32 %s505_s28, 4  ;;  %s4302_s20 = scalar_lea.sflag [#allocation8], %s501_s17  ;;  %s4300_s21 = int_to_ptr.vmem [resolvable:$true] %s513_s21 }
  0x87   : > { %s4298_s19 = scalar_lea.hbm %s4680_s0, %s3448_s26  ;;  %p3905_p11 = pneg %p4291_p7 }
  0x88   : > { %s3903_s1 = scalar_lea.hbm %s4298_s19, 3072  ;;  %s3908_s26 = scalar_lea.hbm %s4680_s0, 6144 }
  0x89   : > { %p3904_p9 = scmp.ne.s32.totalorder %s4298_s19, %s3903_s1  ;;  %p3909_p6 = scmp.lt.s32.totalorder %s4298_s19, %s4680_s0 }
  0x8a   : > { %p3910_p2 = scmp.lt.s32.totalorder %s3908_s26, %s3903_s1 }
  0x8b   : > { %p3906_p12 = pnand %p3905_p11, %p3904_p9 }
  0x8c   : > { %p3911_p5 = por %p3910_p2, %p3909_p6 }
  0x8d   : > { %p3907_p0 = pneg %p3906_p12 }
  0x8f   : > { %p3912_p4 = pnand %p3911_p5, %p3907_p0 }
  0x91   : > { %3915 = shalt.err (!%p3912_p4)
}
  0x92   : > { %s3916_s17 = scalar_lea.vmem %s4300_s21, 3072  ;;  %s4023_s13 = smov [#allocation7]  }
  0x93   : > { %p3917_p1 = scmp.ne.s32.totalorder %s4300_s21, %s3916_s17  ;;  %s3921_s28 = sshll.u32 %s4023_s13, 4  ;;  %s3922_s28 = int_to_ptr.vmem [resolvable:$false] %s3921_s28 }
  0x94   : > { %s3923_s2 = scalar_lea.vmem %s3922_s28, 6144  ;;  %p3924_p12 = scmp.lt.s32.totalorder %s4300_s21, %s3922_s28 }
  0x95   : > { %p3919_p10 = pnand %p3917_p1, %p3905_p11  ;;  %p3925_p8 = scmp.lt.s32.totalorder %s3923_s2, %s3916_s17 }
  0x97   : > { %p3920_p9 = pneg %p3919_p10  ;;  %p3926_p13 = por %p3925_p8, %p3924_p12 }
  0x99   : > { %p3927_p3 = pnand %p3926_p13, %p3920_p9 }
  0x9b   : > { %3930 = shalt.err (!%p3927_p3)
}
  0x9c   : > { %s4024_s1 = smov 192   ;;  %s4025_s4 = smov 12  }
  0x9d   : > { %3514 = dma.hbm_to_vmem [thread:$0]  (!%p4291_p7), %s4298_s19, 3072, %s4300_s21, %s4302_s20, %s4024_s1, %s4024_s1, %s4025_s4  }
  0x9e   : > { %p4712_p1 = scmp.ne.s32.totalorder %s4702_s25, 0 }
  0x9f   : > { %s4326_s27 = sand.u32 (!%p4712_p1), 1, %s4003_s6   ;;  %p4713_p3 = scmp.ne.s32.totalorder (!%p4712_p1), %s4708_s22, 0 }
  0xa0   : > { %525 = sbr.rel (%p4712_p1) target bundleno = 1130 (0x46a), region = 76  ;;  %s528_s16 = scalar_lea.sflag (!%p4712_p1), [#allocation8], %s4326_s27 }
  0xa1   : > { %s3449_s26 = smul.u32 (!%p4712_p1), 192, %s4326_s27 }
  0xa3   : > { %s4330_s17 = scalar_lea.vmem (!%p4712_p1), [#allocation7], %s3449_s26 }
  0xa5   : > { %3974 = dma.done.wait (%p4713_p3), %s528_s16, 3072  }
  0xa6   : > { %3976 = vsyncadd (%p4713_p3), %s528_s16, 4294964224  ;;  %p4714_p4 = scmp.eq.s32.totalorder %s4140_s24, 0 }
  0xa8   : > { %3978 = dma.done.wait (%p4714_p4), [#allocation11], 2048   ;;  %p4715_p13 = pmov %p4714_p4 }
  0xa9   : > { %p4716_p8 = pmov %p4714_p4 }
  0xaa   : > { %3980 = vsyncadd (%p4715_p13), [#allocation11], 4294965248 }
  0xab   : > { %3982 = dma.done.wait (%p4716_p8), [#allocation14], 2048   ;;  %p4717_p10 = pmov %p4714_p4 }
  0xac   : > { %p4718_p7 = pmov %p4714_p4 }
  0xad   : > { %3984 = vsyncadd (%p4717_p10), [#allocation14], 4294965248 }
  0xae   : > { %3986 = dma.done.wait (%p4718_p7), [#allocation17], 2048   ;;  %p4719_p11 = pmov %p4714_p4 }
  0xaf   : > { %p4720_p0 = pmov %p4714_p4 }
  0xb0   : > { %3988 = vsyncadd (%p4719_p11), [#allocation17], 4294965248 }
  0xb1   : > { %3990 = dma.done.wait (%p4720_p0), [#allocation20], 4096   ;;  %p4721_p6 = pmov %p4720_p0 }
  0xb2   : > { %v3583_v0 = vld [vmem:[#allocation10 + $0x38] sm:$0xff]   ;;  %v3584_v1 = vld [vmem:[#allocation10 + $0x30] sm:$0xff]   ;;  %v3585_v2 = vld [vmem:[#allocation10 + $0x28] sm:$0xff]   ;;  %s853_s25 = sld [smem:[#allocation2]]  ;;  %s2888_s20 = sshll.u32 %s4326_s27, 7 }
  0xb3   : > { %3992 = vsyncadd (%p4721_p6), [#allocation20], 4294963200  ;;  %3191 = vmatprep.subr.bf16.mxu0 %v3583_v0  ;;  %v3586_v3 = vld [vmem:[#allocation10 + $0x20] sm:$0xff]   ;;  %v3587_v5 = vld [vmem:[#allocation10 + $0x18] sm:$0xff]   ;;  %s1322_s22 = sld [smem:[#allocation3]]  ;;  %s4612_s13 = scalar_lea.vmem [#allocation22], %s2888_s20 }
  0xb4   : > { %3192 = vmatpush3.bf16.msra.mxu0 %v3583_v0  ;;  %v3591_v4 = vld [vmem:[%s4330_s17] ss:$12 sps:$4 sm:$0xff]   ;;  %v3588_v6 = vld [vmem:[#allocation10 + $0x10] sm:$0xff]   ;;  %v3597_v9 = vld [vmem:[#allocation13 + $0x38] sm:$0xff]   ;;  %s1806_s29 = sld [smem:[#allocation4]]  ;;  %s2998_s28 = sshll.u32 %s4140_s24, 11 }
  0xb5   : > { %3193 = vmatprep.subr.bf16.mxu0 %v3584_v1  ;;  %3207 = vmatprep.mubr.bf16.mxu0 %v3591_v4  ;;  %v3589_v7 = vld [vmem:[#allocation10 + $0x8] sm:$0xff]   ;;  %v3590_v8 = vld [vmem:[#allocation10] sm:$0xff]   ;;  %v3599_v11 = vld [vmem:[%s4330_s17 + $0x30] ss:$12 sps:$4 sm:$0xff]   ;;  %s643_s19 = sld [smem:[#allocation5]]  ;;  %s2716_s2 = sshll.u32 %s4612_s13, 4  ;;  %s4635_s2 = int_to_ptr.vmem [resolvable:$true] %s2716_s2 }
  0xb6   : > { %v3594_v10 = vld [vmem:[%s4330_s17 + $0x18] ss:$12 sps:$4 sm:$0xff]   ;;  %v3598_v12 = vld [vmem:[#allocation13 + $0x30] sm:$0xff]   ;;  %v3603_v13 = vld [vmem:[#allocation13 + $0x28] sm:$0xff]   ;;  %s2467_s21 = sld [smem:[#allocation6]]  ;;  %s4633_s26 = scalar_lea.hbm %s4692_s14, %s2998_s28 }
  0xb7   : > { %v3601_v14 = vld [vmem:[%s4330_s17 + $0x48] ss:$12 sps:$4 sm:$0xff]   ;;  %v3605_v15 = vld [vmem:[%s4330_s17 + $0x60] ss:$12 sps:$4 sm:$0xff]   ;;  %v3609_v17 = vld [vmem:[#allocation13 + $0x18] sm:$0xff]   ;;  %s2703_s16 = scalar_lea.sflag [#allocation9], %s4326_s27 }
  0xb8   : > { %3194 = vmatpush3.bf16.msra.mxu0 %v3584_v1  ;;  %v3604_v16 = vld [vmem:[#allocation13 + $0x20] sm:$0xff]   ;;  %v3639_v18 = vld [vmem:[#allocation12 + $0x38] sm:$0xff]   ;;  %v3640_v19 = vld [vmem:[#allocation12 + $0x30] sm:$0xff]   ;;  %v4376_v59 = vstv %s853_s25  ;;  %p4722_p5 = scmp.ne.s32.totalorder %s4709_s18, 0  ;;  %s4026_s24 = smov [#allocation22]  }
  0xb9   : > { %3195 = vmatprep.subr.bf16.mxu0 %v3585_v2  ;;  %v3607_v20 = vld [vmem:[%s4330_s17 + $0x78] ss:$12 sps:$4 sm:$0xff]   ;;  %3223 = vmatprep.subr.bf16.mxu1 %v3639_v18  ;;  %v3610_v21 = vld [vmem:[#allocation13 + $0x10] sm:$0xff]   ;;  %v3641_v23 = vld [vmem:[#allocation12 + $0x28] sm:$0xff]   ;;  %s3935_s25 = sshll.u32 %s4026_s24, 4  ;;  %s3936_s25 = int_to_ptr.vmem [resolvable:$false] %s3935_s25 }
  0xba   : > { %v3611_v22 = vld [vmem:[%s4330_s17 + $0x90] ss:$12 sps:$4 sm:$0xff]   ;;  %3224 = vmatpush3.bf16.msra.mxu1 %v3639_v18  ;;  %v3642_v24 = vld [vmem:[#allocation12 + $0x20] sm:$0xff]   ;;  %v3615_v25 = vld [vmem:[#allocation13 + $0x8] sm:$0xff]   ;;  %p3938_p1 = scmp.lt.s32.totalorder %s4635_s2, %s3936_s25 }
  0xbb   : > { %3225 = vmatprep.subr.bf16.mxu1 %v3640_v19  ;;  %v3613_v26 = vld [vmem:[%s4330_s17 + $0xa8] ss:$12 sps:$4 sm:$0xff]   ;;  %v3593_v27 = vld [vmem:[%s4330_s17 + $0x4] ss:$12 sps:$4 sm:$0xff]   ;;  %v3643_v29 = vld [vmem:[#allocation12 + $0x18] sm:$0xff]  }
  0xbc   : > { %3196 = vmatpush3.bf16.msra.mxu0 %v3585_v2  ;;  %v3616_v28 = vld [vmem:[#allocation13] sm:$0xff]   ;;  %v3617_v30 = vld [vmem:[#allocation16 + $0x38] sm:$0xff]   ;;  %v3618_v33 = vld [vmem:[#allocation16 + $0x30] sm:$0xff]  }
  0xbd   : > { %3197 = vmatprep.subr.bf16.mxu0 %v3586_v3  ;;  %v3596_v31 = vld [vmem:[%s4330_s17 + $0x1c] ss:$12 sps:$4 sm:$0xff]   ;;  %v3619_v32 = vld [vmem:[%s4330_s17 + $0x34] ss:$12 sps:$4 sm:$0xff]   ;;  %v3620_v35 = vld [vmem:[%s4330_s17 + $0x4c] ss:$12 sps:$4 sm:$0xff]  }
  0xbe   : > { %3226 = vmatpush3.bf16.msra.mxu1 %v3640_v19  ;;  %v3621_v34 = vld [vmem:[#allocation16 + $0x28] sm:$0xff]   ;;  %v3623_v36 = vld [vmem:[%s4330_s17 + $0x64] ss:$12 sps:$4 sm:$0xff]   ;;  %v3625_v38 = vld [vmem:[#allocation16 + $0x18] sm:$0xff]  }
  0xbf   : > { %3227 = vmatprep.subr.bf16.mxu1 %v3641_v23  ;;  %v3622_v37 = vld [vmem:[#allocation16 + $0x20] sm:$0xff]   ;;  %v3624_v39 = vld [vmem:[%s4330_s17 + $0x7c] ss:$12 sps:$4 sm:$0xff]   ;;  %v3626_v41 = vld [vmem:[#allocation16 + $0x10] sm:$0xff]  }
  0xc0   : > { %3198 = vmatpush3.bf16.msra.mxu0 %v3586_v3  ;;  %v3627_v40 = vld [vmem:[%s4330_s17 + $0x94] ss:$12 sps:$4 sm:$0xff]   ;;  %v3629_v42 = vld [vmem:[#allocation16 + $0x8] sm:$0xff]   ;;  %v3633_v47 = vld [vmem:[%s4330_s17 + $0x38] ss:$12 sps:$4 sm:$0xff]  }
  0xc1   : > { %3199 = vmatprep.subr.bf16.mxu0 %v3587_v5  ;;  %v3628_v43 = vld [vmem:[%s4330_s17 + $0xac] ss:$12 sps:$4 sm:$0xff]   ;;  %v3631_v44 = vld [vmem:[%s4330_s17 + $0x8] ss:$12 sps:$4 sm:$0xff]   ;;  %v3630_v45 = vld [vmem:[#allocation16] sm:$0xff]  }
  0xc2   : > { %3228 = vmatpush3.bf16.msra.mxu1 %v3641_v23  ;;  %v3632_v46 = vld [vmem:[%s4330_s17 + $0x20] ss:$12 sps:$4 sm:$0xff]   ;;  %v3644_v48 = vld [vmem:[#allocation12 + $0x10] sm:$0xff]   ;;  %v3647_v53 = vld [vmem:[#allocation15 + $0x38] sm:$0xff]  }
  0xc3   : > { %3229 = vmatprep.subr.bf16.mxu1 %v3642_v24  ;;  %v3645_v49 = vld [vmem:[#allocation12 + $0x8] sm:$0xff]   ;;  %v3634_v50 = vld [vmem:[%s4330_s17 + $0x50] ss:$12 sps:$4 sm:$0xff]   ;;  %v3646_v52 = vld [vmem:[#allocation12] sm:$0xff]  }
  0xc4   : > { %3200 = vmatpush3.bf16.msra.mxu0 %v3587_v5  ;;  %v3635_v51 = vld [vmem:[%s4330_s17 + $0x68] ss:$12 sps:$4 sm:$0xff]   ;;  %v3636_v54 = vld [vmem:[%s4330_s17 + $0x80] ss:$12 sps:$4 sm:$0xff]   ;;  %v3637_v55 = vld [vmem:[%s4330_s17 + $0x98] ss:$12 sps:$4 sm:$0xff]  }
  0xc5   : > { %3201 = vmatprep.subr.bf16.mxu0 %v3588_v6  ;;  %v3638_v56 = vld [vmem:[%s4330_s17 + $0xb0] ss:$12 sps:$4 sm:$0xff]   ;;  %s3931_s17 = scalar_lea.vmem %s4635_s2, 2048 }
  0xc6   : > { %3230 = vmatpush3.bf16.msra.mxu1 %v3642_v24  ;;  %p3932_p2 = scmp.ne.s32.totalorder %s4635_s2, %s3931_s17 }
  0xc7   : > { %3231 = vmatprep.subr.bf16.mxu1 %v3643_v29 }
  0xc8   : > { %3202 = vmatpush3.bf16.msra.mxu0 %v3588_v6  ;;  %p3933_p9 = pnand %p3932_p2, %p4722_p5 }
  0xc9   : > { %3203 = vmatprep.subr.bf16.mxu0 %v3589_v7 }
  0xca   : > { %3232 = vmatpush3.bf16.msra.mxu1 %v3643_v29  ;;  %p3934_p12 = pneg %p3933_p9 }
  0xcb   : > { %3233 = vmatprep.subr.bf16.mxu1 %v3644_v48 }
  0xcc   : > { %3204 = vmatpush3.bf16.msra.mxu0 %v3589_v7 }
  0xcd   : > { %3205 = vmatprep.subr.bf16.mxu0 %v3590_v8 }
  0xce   : > { %3234 = vmatpush3.bf16.msra.mxu1 %v3644_v48 }
  0xcf   : > { %3235 = vmatprep.subr.bf16.mxu1 %v3645_v49 }
  0xd0   : > { %3206 = vmatpush3.bf16.msra.mxu0 %v3590_v8 }
  0xd1   : > { %3255 = vmatprep.subr.bf16.mxu0 %v3597_v9 }
  0xd2   : > { %3236 = vmatpush3.bf16.msra.mxu1 %v3645_v49  ;;  %v3653_v49 = vld [vmem:[#allocation15 + $0x8] sm:$0xff]  }
  0xd3   : > { %3208 = vmatmul.mubr.bf16.vlgmr.msra.gmra.mxu0 %v3594_v10  ;;  %3237 = vmatprep.subr.bf16.mxu1 %v3646_v52  ;;  %v3648_v10 = vld [vmem:[#allocation15 + $0x30] sm:$0xff]  }
  0xd4   : > { %3256 = vmatpush3.bf16.msra.mxu0 %v3597_v9  ;;  %3211 = vmatprep.mubr.bf16.mxu0 %v3599_v11 }
  0xd5   : > { %3257 = vmatprep.subr.bf16.mxu0 %v3598_v12 }
  0xd6   : > { %3238 = vmatpush3.bf16.msra.mxu1 %v3646_v52 }
  0xd7   : > { %3287 = vmatprep.subr.bf16.mxu1 %v3647_v53 }
  0xd8   : > { %3258 = vmatpush3.bf16.msra.mxu0 %v3598_v12 }
  0xd9   : > { %3259 = vmatprep.subr.bf16.mxu0 %v3603_v13 }
  0xdb   : > { %3212 = vmatmul.mubr.bf16.gmra.mxu0 %v3601_v14 }
  0xdc   : > { %3260 = vmatpush3.bf16.msra.mxu0 %v3603_v13  ;;  %3215 = vmatprep.mubr.bf16.mxu0 %v3605_v15 }
  0xdd   : > { %3261 = vmatprep.subr.bf16.mxu0 %v3604_v16 }
  0xe0   : > { %3262 = vmatpush3.bf16.msra.mxu0 %v3604_v16 }
  0xe1   : > { %3263 = vmatprep.subr.bf16.mxu0 %v3609_v17 }
  0xe3   : > { %3216 = vmatmul.mubr.bf16.gmra.mxu0 %v3607_v20 }
  0xe4   : > { %3264 = vmatpush3.bf16.msra.mxu0 %v3609_v17  ;;  %3219 = vmatprep.mubr.bf16.mxu0 %v3611_v22  ;;  %v3649_v17 = vld [vmem:[#allocation15 + $0x28] sm:$0xff]  }
  0xe5   : > { %3265 = vmatprep.subr.bf16.mxu0 %v3610_v21 }
  0xe8   : > { %3266 = vmatpush3.bf16.msra.mxu0 %v3610_v21 }
  0xe9   : > { %3267 = vmatprep.subr.bf16.mxu0 %v3615_v25 }
  0xeb   : > { %3220 = vmatmul.mubr.bf16.gmra.mxu0 %v3613_v26  ;;  %v3650_v26 = vld [vmem:[#allocation15 + $0x20] sm:$0xff]  }
  0xec   : > { %3268 = vmatpush3.bf16.msra.mxu0 %v3615_v25  ;;  %3271 = vmatprep.mubr.bf16.mxu0 %v3593_v27 }
  0xed   : > { %3269 = vmatprep.subr.bf16.mxu0 %v3616_v28 }
  0xf0   : > { %3270 = vmatpush3.bf16.msra.mxu0 %v3616_v28 }
  0xf1   : > { %3319 = vmatprep.subr.bf16.mxu0 %v3617_v30 }
  0xf3   : > { %3272 = vmatmul.mubr.bf16.vlgmr.msra.gmra.mxu0 %v3596_v31 }
  0xf4   : > { %3320 = vmatpush3.bf16.msra.mxu0 %v3617_v30  ;;  %3275 = vmatprep.mubr.bf16.mxu0 %v3619_v32 }
  0xf5   : > { %3321 = vmatprep.subr.bf16.mxu0 %v3618_v33 }
  0xf8   : > { %3322 = vmatpush3.bf16.msra.mxu0 %v3618_v33  ;;  %v3651_v33 = vld [vmem:[#allocation15 + $0x18] sm:$0xff]  }
  0xf9   : > { %3323 = vmatprep.subr.bf16.mxu0 %v3621_v34 }
  0xfb   : > { %3276 = vmatmul.mubr.bf16.gmra.mxu0 %v3620_v35 }
  0xfc   : > { %3324 = vmatpush3.bf16.msra.mxu0 %v3621_v34  ;;  %3279 = vmatprep.mubr.bf16.mxu0 %v3623_v36 }
  0xfd   : > { %3325 = vmatprep.subr.bf16.mxu0 %v3622_v37 }
 0x100   : > { %3326 = vmatpush3.bf16.msra.mxu0 %v3622_v37 }
 0x101   : > { %3327 = vmatprep.subr.bf16.mxu0 %v3625_v38 }
 0x103   : > { %3280 = vmatmul.mubr.bf16.gmra.mxu0 %v3624_v39 }
 0x104   : > { %3328 = vmatpush3.bf16.msra.mxu0 %v3625_v38  ;;  %3283 = vmatprep.mubr.bf16.mxu0 %v3627_v40 }
 0x105   : > { %3329 = vmatprep.subr.bf16.mxu0 %v3626_v41 }
 0x108   : > { %3330 = vmatpush3.bf16.msra.mxu0 %v3626_v41 }
 0x109   : > { %3331 = vmatprep.subr.bf16.mxu0 %v3629_v42 }
 0x10b   : > { %3284 = vmatmul.mubr.bf16.gmra.mxu0 %v3628_v43 }
 0x10c   : > { %3332 = vmatpush3.bf16.msra.mxu0 %v3629_v42  ;;  %3335 = vmatprep.mubr.bf16.mxu0 %v3631_v44  ;;  %v3652_v42 = vld [vmem:[#allocation15 + $0x10] sm:$0xff]  }
 0x10d   : > { %3333 = vmatprep.subr.bf16.mxu0 %v3630_v45 }
 0x110   : > { %3334 = vmatpush3.bf16.msra.mxu0 %v3630_v45 }
 0x113   : > { %3336 = vmatmul.mubr.bf16.vlgmr.msra.gmra.mxu0 %v3632_v46 }
 0x114   : > { %3339 = vmatprep.mubr.bf16.mxu0 %v3633_v47 }
 0x11b   : > { %3340 = vmatmul.mubr.bf16.gmra.mxu0 %v3634_v50 }
 0x11c   : > { %3343 = vmatprep.mubr.bf16.mxu0 %v3635_v51 }
 0x123   : > { %3344 = vmatmul.mubr.bf16.gmra.mxu0 %v3636_v54 }
 0x124   : > { %3347 = vmatprep.mubr.bf16.mxu0 %v3637_v55 }
 0x12b   : > { %3348 = vmatmul.mubr.bf16.gmra.mxu0 %v3638_v56 }
 0x193   : > { %v3209_v57 = vpop.f32.mrf.mxu0 }
 0x194   : > { %v873_v63 = vmul.f32 %v3209_v57, %v4376_v59  ;;  %vm856_vm2 = vcmp.gt.f32.partialorder %v3209_v57, 0.0 }
 0x195   : > { %v790_v58 = vpop.f32.mrf.mxu0 }
 0x196   : > { %v871_v61 = vmul.f32 %v4376_v59, %v790_v58  ;;  %vm854_vm1 = vcmp.gt.f32.partialorder %v790_v58, 0.0  ;;  %v889_v6 = vsel %vm856_vm2, %v3209_v57, %v873_v63  ;;  %v4394_v57 = vstv %s1322_s22  ;;  %s3937_s22 = scalar_lea.vmem %s3936_s25, 4096 }
 0x197   : > { %v3210_v60 = vpop.f32.mrf.mxu0  ;;  %p3939_p3 = scmp.lt.s32.totalorder %s3937_s22, %s3931_s17 }
 0x198   : > { %vm857_vm0 = vcmp.gt.f32.partialorder %v3210_v60, 0.0  ;;  %v874_v62 = vmul.f32 %v3210_v60, %v4376_v59  ;;  %v887_v4 = vsel %vm854_vm1, %v790_v58, %v871_v61 }
 0x199   : > { %v793_v0 = vpop.f32.mrf.mxu0  ;;  %p3940_p4 = por %p3939_p3, %p3938_p1 }
 0x19a   : > { %v872_v1 = vmul.f32 %v4376_v59, %v793_v0  ;;  %vm855_vm3 = vcmp.gt.f32.partialorder %v793_v0, 0.0  ;;  %v890_v2 = vsel %vm857_vm0, %v3210_v60, %v874_v62  ;;  %v3654_v60 = vld [vmem:[#allocation15] sm:$0xff]  }
 0x19b   : > { %v3213_v3 = vpop.f32.mrf.mxu0  ;;  %v904_v9 = vpack.c.bf16 %v890_v2, %v889_v6  ;;  %v3655_v2 = vld [vmem:[#allocation18 + $0x38] sm:$0xff]   ;;  %p3941_p13 = pnand %p3940_p4, %p3934_p12 }
 0x19c   : > { %v888_v5 = vsel %vm855_vm3, %v793_v0, %v872_v1  ;;  %v877_v14 = vmul.f32 %v3213_v3, %v4376_v59  ;;  %vm860_vm6 = vcmp.gt.f32.partialorder %v3213_v3, 0.0 }
 0x19d   : > { %v806_v7 = vpop.f32.mrf.mxu0  ;;  %v903_v8 = vpack.c.bf16 %v888_v5, %v887_v4 }
 0x19e   : > { %v875_v12 = vmul.f32 %v4376_v59, %v806_v7  ;;  %vm858_vm5 = vcmp.gt.f32.partialorder %v806_v7, 0.0  ;;  %v893_v22 = vsel %vm860_vm6, %v3213_v3, %v877_v14 }
 0x19f   : > { %v3214_v11 = vpop.f32.mrf.mxu0  ;;  %3239 = vmatprep.mubr.bf16.mxu1 %v903_v8 }
 0x1a0   : > { %vm861_vm4 = vcmp.gt.f32.partialorder %v3214_v11, 0.0  ;;  %v878_v13 = vmul.f32 %v3214_v11, %v4376_v59  ;;  %3240 = vmatmul.mubr.bf16.vlgmr.msra.gmra.mxu1 %v904_v9  ;;  %v891_v20 = vsel %vm858_vm5, %v806_v7, %v875_v12 }
 0x1a1   : > { %v809_v15 = vpop.f32.mrf.mxu0  ;;  %3288 = vmatpush3.bf16.msra.mxu1 %v3647_v53 }
 0x1a2   : > { %vm859_vm7 = vcmp.gt.f32.partialorder %v809_v15, 0.0  ;;  %v876_v16 = vmul.f32 %v4376_v59, %v809_v15  ;;  %3289 = vmatprep.subr.bf16.mxu1 %v3648_v10  ;;  %v894_v18 = vsel %vm861_vm4, %v3214_v11, %v878_v13  ;;  %v3656_v11 = vld [vmem:[#allocation18 + $0x30] sm:$0xff]  }
 0x1a3   : > { %v3217_v19 = vpop.f32.mrf.mxu0  ;;  %v906_v25 = vpack.c.bf16 %v894_v18, %v893_v22  ;;  %v3657_v18 = vld [vmem:[#allocation18 + $0x28] sm:$0xff]  }
 0x1a4   : > { %v892_v21 = vsel %vm859_vm7, %v809_v15, %v876_v16  ;;  %v881_v30 = vmul.f32 %v3217_v19, %v4376_v59  ;;  %vm864_vm10 = vcmp.gt.f32.partialorder %v3217_v19, 0.0 }
 0x1a5   : > { %v822_v23 = vpop.f32.mrf.mxu0  ;;  %3290 = vmatpush3.bf16.msra.mxu1 %v3648_v10  ;;  %v905_v24 = vpack.c.bf16 %v892_v21, %v891_v20 }
 0x1a6   : > { %3291 = vmatprep.subr.bf16.mxu1 %v3649_v17  ;;  %v879_v28 = vmul.f32 %v4376_v59, %v822_v23  ;;  %vm862_vm9 = vcmp.gt.f32.partialorder %v822_v23, 0.0  ;;  %v897_v38 = vsel %vm864_vm10, %v3217_v19, %v881_v30 }
 0x1a7   : > { %v3218_v27 = vpop.f32.mrf.mxu0  ;;  %3243 = vmatprep.mubr.bf16.mxu1 %v905_v24 }
 0x1a8   : > { %vm865_vm8 = vcmp.gt.f32.partialorder %v3218_v27, 0.0  ;;  %v882_v29 = vmul.f32 %v3218_v27, %v4376_v59  ;;  %3244 = vmatmul.mubr.bf16.gmra.mxu1 %v906_v25  ;;  %v895_v36 = vsel %vm862_vm9, %v822_v23, %v879_v28 }
 0x1a9   : > { %v825_v31 = vpop.f32.mrf.mxu0  ;;  %3292 = vmatpush3.bf16.msra.mxu1 %v3649_v17 }
 0x1aa   : > { %vm863_vm11 = vcmp.gt.f32.partialorder %v825_v31, 0.0  ;;  %v880_v32 = vmul.f32 %v4376_v59, %v825_v31  ;;  %3293 = vmatprep.subr.bf16.mxu1 %v3650_v26  ;;  %v898_v34 = vsel %vm865_vm8, %v3218_v27, %v882_v29  ;;  %v3658_v27 = vld [vmem:[#allocation18 + $0x20] sm:$0xff]  }
 0x1ab   : > { %v3221_v35 = vpop.f32.mrf.mxu0  ;;  %v908_v41 = vpack.c.bf16 %v898_v34, %v897_v38  ;;  %v3659_v34 = vld [vmem:[#allocation18 + $0x18] sm:$0xff]  }
 0x1ac   : > { %v896_v37 = vsel %vm863_vm11, %v825_v31, %v880_v32  ;;  %v885_v46 = vmul.f32 %v3221_v35, %v4376_v59  ;;  %vm868_vm14 = vcmp.gt.f32.partialorder %v3221_v35, 0.0 }
 0x1ad   : > { %v838_v39 = vpop.f32.mrf.mxu0  ;;  %3294 = vmatpush3.bf16.msra.mxu1 %v3650_v26  ;;  %v907_v40 = vpack.c.bf16 %v896_v37, %v895_v36 }
 0x1ae   : > { %3295 = vmatprep.subr.bf16.mxu1 %v3651_v33  ;;  %v883_v44 = vmul.f32 %v4376_v59, %v838_v39  ;;  %vm866_vm13 = vcmp.gt.f32.partialorder %v838_v39, 0.0  ;;  %v901_v54 = vsel %vm868_vm14, %v3221_v35, %v885_v46 }
 0x1af   : > { %v3222_v43 = vpop.f32.mrf.mxu0  ;;  %3247 = vmatprep.mubr.bf16.mxu1 %v907_v40 }
 0x1b0   : > { %vm869_vm12 = vcmp.gt.f32.partialorder %v3222_v43, 0.0  ;;  %v886_v45 = vmul.f32 %v3222_v43, %v4376_v59  ;;  %3248 = vmatmul.mubr.bf16.gmra.mxu1 %v908_v41  ;;  %v899_v52 = vsel %vm866_vm13, %v838_v39, %v883_v44 }
 0x1b1   : > { %v841_v47 = vpop.f32.mrf.mxu0  ;;  %3296 = vmatpush3.bf16.msra.mxu1 %v3651_v33 }
 0x1b2   : > { %vm867_vm15 = vcmp.gt.f32.partialorder %v841_v47, 0.0  ;;  %v884_v48 = vmul.f32 %v4376_v59, %v841_v47  ;;  %3297 = vmatprep.subr.bf16.mxu1 %v3652_v42  ;;  %v902_v50 = vsel %vm869_vm12, %v3222_v43, %v886_v45  ;;  %v3660_v43 = vld [vmem:[#allocation18 + $0x10] sm:$0xff]  }
 0x1b3   : > { %v3273_v51 = vpop.f32.mrf.mxu0  ;;  %v910_v58 = vpack.c.bf16 %v902_v50, %v901_v54  ;;  %v3661_v50 = vld [vmem:[#allocation18 + $0x8] sm:$0xff]  }
 0x1b4   : > { %v900_v53 = vsel %vm867_vm15, %v841_v47, %v884_v48  ;;  %v1342_v63 = vmul.f32 %v3273_v51, %v4394_v57  ;;  %vm1325_vm2 = vcmp.gt.f32.partialorder %v3273_v51, 0.0 }
 0x1b5   : > { %v1259_v55 = vpop.f32.mrf.mxu0  ;;  %3298 = vmatpush3.bf16.msra.mxu1 %v3652_v42  ;;  %v909_v56 = vpack.c.bf16 %v900_v53, %v899_v52 }
 0x1b6   : > { %3299 = vmatprep.subr.bf16.mxu1 %v3653_v49  ;;  %v1340_v62 = vmul.f32 %v4394_v57, %v1259_v55  ;;  %vm1323_vm1 = vcmp.gt.f32.partialorder %v1259_v55, 0.0  ;;  %v1358_v7 = vsel %vm1325_vm2, %v3273_v51, %v1342_v63 }
 0x1b7   : > { %3251 = vmatprep.mubr.bf16.mxu1 %v909_v56  ;;  %v3274_v61 = vpop.f32.mrf.mxu0 }
 0x1b8   : > { %vm1326_vm0 = vcmp.gt.f32.partialorder %v3274_v61, 0.0  ;;  %v1343_v59 = vmul.f32 %v3274_v61, %v4394_v57  ;;  %3252 = vmatmul.mubr.bf16.gmra.mxu1 %v910_v58  ;;  %v1356_v5 = vsel %vm1323_vm1, %v1259_v55, %v1340_v62  ;;  %v3662_v62 = vld [vmem:[#allocation18] sm:$0xff]  }
 0x1b9   : > { %v1262_v0 = vpop.f32.mrf.mxu0  ;;  %3300 = vmatpush3.bf16.msra.mxu1 %v3653_v49 }
 0x1ba   : > { %vm1324_vm3 = vcmp.gt.f32.partialorder %v1262_v0, 0.0  ;;  %v1341_v1 = vmul.f32 %v4394_v57, %v1262_v0  ;;  %3301 = vmatprep.subr.bf16.mxu1 %v3654_v60  ;;  %v1359_v3 = vsel %vm1326_vm0, %v3274_v61, %v1343_v59 }
 0x1bb   : > { %v3277_v4 = vpop.f32.mrf.mxu0  ;;  %v1373_v10 = vpack.c.bf16 %v1359_v3, %v1358_v7 }
 0x1bc   : > { %v1357_v6 = vsel %vm1324_vm3, %v1262_v0, %v1341_v1  ;;  %v1346_v15 = vmul.f32 %v3277_v4, %v4394_v57  ;;  %vm1329_vm6 = vcmp.gt.f32.partialorder %v3277_v4, 0.0 }
 0x1bd   : > { %v1275_v8 = vpop.f32.mrf.mxu0  ;;  %3302 = vmatpush3.bf16.msra.mxu1 %v3654_v60  ;;  %v1372_v9 = vpack.c.bf16 %v1357_v6, %v1356_v5  ;;  %v4412_v60 = vstv %s1806_s29 }
 0x1be   : > { %3351 = vmatprep.subr.bf16.mxu1 %v3655_v2  ;;  %v1344_v13 = vmul.f32 %v4394_v57, %v1275_v8  ;;  %vm1327_vm5 = vcmp.gt.f32.partialorder %v1275_v8, 0.0  ;;  %v1362_v23 = vsel %vm1329_vm6, %v3277_v4, %v1346_v15 }
 0x1bf   : > { %v3278_v12 = vpop.f32.mrf.mxu0  ;;  %3303 = vmatprep.mubr.bf16.mxu1 %v1372_v9 }
 0x1c0   : > { %vm1330_vm4 = vcmp.gt.f32.partialorder %v3278_v12, 0.0  ;;  %v1347_v14 = vmul.f32 %v3278_v12, %v4394_v57  ;;  %3304 = vmatmul.mubr.bf16.vlgmr.msra.gmra.mxu1 %v1373_v10  ;;  %v1360_v21 = vsel %vm1327_vm5, %v1275_v8, %v1344_v13 }
 0x1c1   : > { %v1278_v16 = vpop.f32.mrf.mxu0  ;;  %3352 = vmatpush3.bf16.msra.mxu1 %v3655_v2 }
 0x1c2   : > { %vm1328_vm7 = vcmp.gt.f32.partialorder %v1278_v16, 0.0  ;;  %v1345_v17 = vmul.f32 %v4394_v57, %v1278_v16  ;;  %3353 = vmatprep.subr.bf16.mxu1 %v3656_v11  ;;  %v1363_v19 = vsel %vm1330_vm4, %v3278_v12, %v1347_v14 }
 0x1c3   : > { %v3281_v20 = vpop.f32.mrf.mxu0  ;;  %v1375_v26 = vpack.c.bf16 %v1363_v19, %v1362_v23 }
 0x1c4   : > { %v1361_v22 = vsel %vm1328_vm7, %v1278_v16, %v1345_v17  ;;  %v1350_v31 = vmul.f32 %v3281_v20, %v4394_v57  ;;  %vm1333_vm10 = vcmp.gt.f32.partialorder %v3281_v20, 0.0 }
 0x1c5   : > { %v1291_v24 = vpop.f32.mrf.mxu0  ;;  %3354 = vmatpush3.bf16.msra.mxu1 %v3656_v11  ;;  %v1374_v25 = vpack.c.bf16 %v1361_v22, %v1360_v21 }
 0x1c6   : > { %3355 = vmatprep.subr.bf16.mxu1 %v3657_v18  ;;  %v1348_v29 = vmul.f32 %v4394_v57, %v1291_v24  ;;  %vm1331_vm9 = vcmp.gt.f32.partialorder %v1291_v24, 0.0  ;;  %v1366_v39 = vsel %vm1333_vm10, %v3281_v20, %v1350_v31 }
 0x1c7   : > { %v3282_v28 = vpop.f32.mrf.mxu0  ;;  %3307 = vmatprep.mubr.bf16.mxu1 %v1374_v25 }
 0x1c8   : > { %vm1334_vm8 = vcmp.gt.f32.partialorder %v3282_v28, 0.0  ;;  %v1351_v30 = vmul.f32 %v3282_v28, %v4394_v57  ;;  %3308 = vmatmul.mubr.bf16.gmra.mxu1 %v1375_v26  ;;  %v1364_v37 = vsel %vm1331_vm9, %v1291_v24, %v1348_v29 }
 0x1c9   : > { %v1294_v32 = vpop.f32.mrf.mxu0  ;;  %3356 = vmatpush3.bf16.msra.mxu1 %v3657_v18 }
 0x1ca   : > { %vm1332_vm11 = vcmp.gt.f32.partialorder %v1294_v32, 0.0  ;;  %v1349_v33 = vmul.f32 %v4394_v57, %v1294_v32  ;;  %3357 = vmatprep.subr.bf16.mxu1 %v3658_v27  ;;  %v1367_v35 = vsel %vm1334_vm8, %v3282_v28, %v1351_v30 }
 0x1cb   : > { %v3285_v36 = vpop.f32.mrf.mxu0  ;;  %v1377_v42 = vpack.c.bf16 %v1367_v35, %v1366_v39 }
 0x1cc   : > { %v1365_v38 = vsel %vm1332_vm11, %v1294_v32, %v1349_v33  ;;  %v1354_v47 = vmul.f32 %v3285_v36, %v4394_v57  ;;  %vm1337_vm14 = vcmp.gt.f32.partialorder %v3285_v36, 0.0  ;;  %v3663_v33 = vld [vmem:[#allocation19 + $0x78] sm:$0xff]  }
 0x1cd   : > { %v1307_v40 = vpop.f32.mrf.mxu0  ;;  %3358 = vmatpush3.bf16.msra.mxu1 %v3658_v27  ;;  %v1376_v41 = vpack.c.bf16 %v1365_v38, %v1364_v37  ;;  %3095 = vmatprep.subr.bf16.mxu0 %v3663_v33 }
 0x1ce   : > { %3359 = vmatprep.subr.bf16.mxu1 %v3659_v34  ;;  %v1352_v45 = vmul.f32 %v4394_v57, %v1307_v40  ;;  %vm1335_vm13 = vcmp.gt.f32.partialorder %v1307_v40, 0.0  ;;  %v1370_v55 = vsel %vm1337_vm14, %v3285_v36, %v1354_v47  ;;  %v3664_v36 = vld [vmem:[#allocation19 + $0x38] sm:$0xff]  }
 0x1cf   : > { %v3286_v44 = vpop.f32.mrf.mxu0  ;;  %3311 = vmatprep.mubr.bf16.mxu1 %v1376_v41  ;;  %3096 = vmatpush3.bf16.msra.mxu0 %v3664_v36 }
 0x1d0   : > { %vm1338_vm12 = vcmp.gt.f32.partialorder %v3286_v44, 0.0  ;;  %v1355_v46 = vmul.f32 %v3286_v44, %v4394_v57  ;;  %3312 = vmatmul.mubr.bf16.gmra.mxu1 %v1377_v42  ;;  %v1368_v53 = vsel %vm1335_vm13, %v1307_v40, %v1352_v45  ;;  %v3665_v42 = vld [vmem:[#allocation19 + $0x70] sm:$0xff]  }
 0x1d1   : > { %v1310_v48 = vpop.f32.mrf.mxu0  ;;  %3360 = vmatpush3.bf16.msra.mxu1 %v3659_v34  ;;  %v3666_v45 = vld [vmem:[#allocation19 + $0x30] sm:$0xff]   ;;  %3097 = vmatprep.subr.bf16.mxu0 %v3665_v42 }
 0x1d2   : > { %vm1336_vm15 = vcmp.gt.f32.partialorder %v1310_v48, 0.0  ;;  %v1353_v49 = vmul.f32 %v4394_v57, %v1310_v48  ;;  %3361 = vmatprep.subr.bf16.mxu1 %v3660_v43  ;;  %v1371_v51 = vsel %vm1338_vm12, %v3286_v44, %v1355_v46 }
 0x1d3   : > { %v3337_v52 = vpop.f32.mrf.mxu0  ;;  %v1379_v61 = vpack.c.bf16 %v1371_v51, %v1370_v55  ;;  %3098 = vmatpush3.bf16.msra.mxu0 %v3666_v45 }
 0x1d4   : > { %v1369_v54 = vsel %vm1336_vm15, %v1310_v48, %v1353_v49  ;;  %v1826_v0 = vmul.f32 %v3337_v52, %v4412_v60  ;;  %vm1809_vm2 = vcmp.gt.f32.partialorder %v3337_v52, 0.0 }
 0x1d5   : > { %v1743_v56 = vpop.f32.mrf.mxu0  ;;  %3362 = vmatpush3.bf16.msra.mxu1 %v3660_v43  ;;  %v1378_v58 = vpack.c.bf16 %v1369_v54, %v1368_v53  ;;  %v3668_v53 = vld [vmem:[#allocation19 + $0x28] sm:$0xff]  }
 0x1d6   : > { %3363 = vmatprep.subr.bf16.mxu1 %v3661_v50  ;;  %v1824_v63 = vmul.f32 %v4412_v60, %v1743_v56  ;;  %vm1807_vm1 = vcmp.gt.f32.partialorder %v1743_v56, 0.0  ;;  %v1842_v7 = vsel %vm1809_vm2, %v3337_v52, %v1826_v0  ;;  %v3676_v0 = vld [vmem:[#allocation19 + $0x8] sm:$0xff]  }
 0x1d7   : > { %3315 = vmatprep.mubr.bf16.mxu1 %v1378_v58  ;;  %v3338_v59 = vpop.f32.mrf.mxu0  ;;  %v3669_v58 = vld [vmem:[#allocation19 + $0x60] sm:$0xff]  }
 0x1d8   : > { %vm1810_vm0 = vcmp.gt.f32.partialorder %v3338_v59, 0.0  ;;  %v1827_v57 = vmul.f32 %v3338_v59, %v4412_v60  ;;  %3316 = vmatmul.mubr.bf16.gmra.mxu1 %v1379_v61  ;;  %v1840_v5 = vsel %vm1807_vm1, %v1743_v56, %v1824_v63  ;;  %v3670_v61 = vld [vmem:[#allocation19 + $0x20] sm:$0xff]   ;;  %v3674_v63 = vld [vmem:[#allocation19 + $0x10] sm:$0xff]  }
 0x1d9   : > { %v1746_v1 = vpop.f32.mrf.mxu0  ;;  %3364 = vmatpush3.bf16.msra.mxu1 %v3661_v50  ;;  %v3667_v50 = vld [vmem:[#allocation19 + $0x68] sm:$0xff]  }
 0x1da   : > { %vm1808_vm3 = vcmp.gt.f32.partialorder %v1746_v1, 0.0  ;;  %v1825_v2 = vmul.f32 %v4412_v60, %v1746_v1  ;;  %3365 = vmatprep.subr.bf16.mxu1 %v3662_v62  ;;  %v1843_v3 = vsel %vm1810_vm0, %v3338_v59, %v1827_v57  ;;  %3099 = vmatprep.subr.bf16.mxu0 %v3667_v50  ;;  %v3672_v59 = vld [vmem:[#allocation19 + $0x18] sm:$0xff]   ;;  %v3675_v57 = vld [vmem:[#allocation19 + $0x48] sm:$0xff]  }
 0x1db   : > { %v3341_v4 = vpop.f32.mrf.mxu0  ;;  %v1857_v10 = vpack.c.bf16 %v1843_v3, %v1842_v7  ;;  %3100 = vmatpush3.bf16.msra.mxu0 %v3668_v53  ;;  %v3679_v3 = vld [vmem:[#allocation19 + $0xb8] sm:$0xff]  }
 0x1dc   : > { %v1841_v6 = vsel %vm1808_vm3, %v1746_v1, %v1825_v2  ;;  %v1830_v14 = vmul.f32 %v3341_v4, %v4412_v60  ;;  %vm1813_vm6 = vcmp.gt.f32.partialorder %v3341_v4, 0.0  ;;  %3101 = vmatprep.subr.bf16.mxu0 %v3669_v58  ;;  %v3677_v1 = vld [vmem:[#allocation19 + $0x40] sm:$0xff]   ;;  %v3683_v7 = vld [vmem:[#allocation19 + $0x98] sm:$0xff]  }
 0x1dd   : > { %v1759_v8 = vpop.f32.mrf.mxu0  ;;  %3366 = vmatpush3.bf16.msra.mxu1 %v3662_v62  ;;  %v1856_v9 = vpack.c.bf16 %v1841_v6, %v1840_v5  ;;  %v3671_v62 = vld [vmem:[#allocation19 + $0x58] sm:$0xff]   ;;  %v3678_v2 = vld [vmem:[#allocation19] sm:$0xff]   ;;  %v3681_v5 = vld [vmem:[#allocation19 + $0xa8] sm:$0xff]  }
 0x1de   : > { %v1828_v12 = vmul.f32 %v4412_v60, %v1759_v8  ;;  %vm1811_vm5 = vcmp.gt.f32.partialorder %v1759_v8, 0.0  ;;  %v1846_v21 = vsel %vm1813_vm6, %v3341_v4, %v1830_v14  ;;  %3383 = vmatprep.subr.bf16.mxu1 %v3679_v3  ;;  %v3680_v4 = vld [vmem:[#allocation19 + $0xb0] sm:$0xff]   ;;  %v3682_v6 = vld [vmem:[#allocation19 + $0xa0] sm:$0xff]  }
 0x1df   : > { %v3342_v11 = vpop.f32.mrf.mxu0  ;;  %3367 = vmatprep.mubr.bf16.mxu1 %v1856_v9  ;;  %3102 = vmatpush3.bf16.msra.mxu0 %v3670_v61  ;;  %v3685_v9 = vld [vmem:[#allocation19 + $0x88] sm:$0xff]  }
 0x1e0   : > { %vm1814_vm4 = vcmp.gt.f32.partialorder %v3342_v11, 0.0  ;;  %v1831_v13 = vmul.f32 %v3342_v11, %v4412_v60  ;;  %3368 = vmatmul.mubr.bf16.vlgmr.msra.gmra.mxu1 %v1857_v10  ;;  %v1844_v19 = vsel %vm1811_vm5, %v1759_v8, %v1828_v12  ;;  %3103 = vmatprep.subr.bf16.mxu0 %v3671_v62  ;;  %v3684_v8 = vld [vmem:[#allocation19 + $0x90] sm:$0xff]   ;;  %v3686_v10 = vld [vmem:[#allocation19 + $0x80] sm:$0xff]  }
 0x1e1   : > { %v1762_v15 = vpop.f32.mrf.mxu0  ;;  %3384 = vmatpush3.bf16.msra.mxu1 %v3679_v3 }
 0x1e2   : > { %vm1812_vm7 = vcmp.gt.f32.partialorder %v1762_v15, 0.0  ;;  %v1829_v16 = vmul.f32 %v4412_v60, %v1762_v15  ;;  %v1847_v17 = vsel %vm1814_vm4, %v3342_v11, %v1831_v13  ;;  %3385 = vmatprep.subr.bf16.mxu1 %v3680_v4 }
 0x1e3   : > { %v3345_v18 = vpop.f32.mrf.mxu0  ;;  %v1859_v24 = vpack.c.bf16 %v1847_v17, %v1846_v21  ;;  %3104 = vmatpush3.bf16.msra.mxu0 %v3672_v59 }
 0x1e4   : > { %v1845_v20 = vsel %vm1812_vm7, %v1762_v15, %v1829_v16  ;;  %v1834_v28 = vmul.f32 %v3345_v18, %v4412_v60  ;;  %vm1817_vm10 = vcmp.gt.f32.partialorder %v3345_v18, 0.0 }
 0x1e5   : > { %v1775_v22 = vpop.f32.mrf.mxu0  ;;  %v1858_v23 = vpack.c.bf16 %v1845_v20, %v1844_v19  ;;  %3386 = vmatpush3.bf16.msra.mxu1 %v3680_v4 }
 0x1e6   : > { %v1832_v26 = vmul.f32 %v4412_v60, %v1775_v22  ;;  %vm1815_vm9 = vcmp.gt.f32.partialorder %v1775_v22, 0.0  ;;  %v1850_v37 = vsel %vm1817_vm10, %v3345_v18, %v1834_v28  ;;  %3387 = vmatprep.subr.bf16.mxu1 %v3681_v5 }
 0x1e7   : > { %v3346_v25 = vpop.f32.mrf.mxu0  ;;  %3371 = vmatprep.mubr.bf16.mxu1 %v1858_v23 }
 0x1e8   : > { %vm1818_vm8 = vcmp.gt.f32.partialorder %v3346_v25, 0.0  ;;  %v1835_v27 = vmul.f32 %v3346_v25, %v4412_v60  ;;  %3372 = vmatmul.mubr.bf16.gmra.mxu1 %v1859_v24  ;;  %v1848_v34 = vsel %vm1815_vm9, %v1775_v22, %v1832_v26  ;;  %v4450_v24 = vstv %s643_s19 }
 0x1e9   : > { %v1778_v29 = vpop.f32.mrf.mxu0  ;;  %3388 = vmatpush3.bf16.msra.mxu1 %v3681_v5 }
 0x1ea   : > { %vm1816_vm11 = vcmp.gt.f32.partialorder %v1778_v29, 0.0  ;;  %v1833_v30 = vmul.f32 %v4412_v60, %v1778_v29  ;;  %v1851_v31 = vsel %vm1818_vm8, %v3346_v25, %v1835_v27  ;;  %3389 = vmatprep.subr.bf16.mxu1 %v3682_v6 }
 0x1eb   : > { %v3349_v32 = vpop.f32.mrf.mxu0  ;;  %v1861_v40 = vpack.c.bf16 %v1851_v31, %v1850_v37 }
 0x1ec   : > { %v1849_v35 = vsel %vm1816_vm11, %v1778_v29, %v1833_v30  ;;  %v1838_v46 = vmul.f32 %v3349_v32, %v4412_v60  ;;  %vm1821_vm14 = vcmp.gt.f32.partialorder %v3349_v32, 0.0 }
 0x1ed   : > { %v1791_v38 = vpop.f32.mrf.mxu0  ;;  %v1860_v39 = vpack.c.bf16 %v1849_v35, %v1848_v34  ;;  %3390 = vmatpush3.bf16.msra.mxu1 %v3682_v6 }
 0x1ee   : > { %v1836_v43 = vmul.f32 %v4412_v60, %v1791_v38  ;;  %vm1819_vm13 = vcmp.gt.f32.partialorder %v1791_v38, 0.0  ;;  %v1854_v54 = vsel %vm1821_vm14, %v3349_v32, %v1838_v46  ;;  %3391 = vmatprep.subr.bf16.mxu1 %v3683_v7 }
 0x1ef   : > { %v3350_v41 = vpop.f32.mrf.mxu0  ;;  %3375 = vmatprep.mubr.bf16.mxu1 %v1860_v39 }
 0x1f0   : > { %vm1822_vm12 = vcmp.gt.f32.partialorder %v3350_v41, 0.0  ;;  %v1839_v44 = vmul.f32 %v3350_v41, %v4412_v60  ;;  %3376 = vmatmul.mubr.bf16.gmra.mxu1 %v1861_v40  ;;  %v1852_v51 = vsel %vm1819_vm13, %v1791_v38, %v1836_v43 }
 0x1f1   : > { %v1794_v47 = vpop.f32.mrf.mxu0  ;;  %3392 = vmatpush3.bf16.msra.mxu1 %v3683_v7 }
 0x1f2   : > { %vm1820_vm15 = vcmp.gt.f32.partialorder %v1794_v47, 0.0  ;;  %v1837_v48 = vmul.f32 %v4412_v60, %v1794_v47  ;;  %v1855_v49 = vsel %vm1822_vm12, %v3350_v41, %v1839_v44  ;;  %v3673_v60 = vld [vmem:[#allocation19 + $0x50] sm:$0xff]   ;;  %3393 = vmatprep.subr.bf16.mxu1 %v3684_v8 }
 0x1f3   : > { %v1863_v56 = vpack.c.bf16 %v1855_v49, %v1854_v54  ;;  %3105 = vmatprep.subr.bf16.mxu0 %v3673_v60 }
 0x1f4   : > { %v1853_v52 = vsel %vm1820_vm15, %v1794_v47, %v1837_v48  ;;  %3106 = vmatpush3.bf16.msra.mxu0 %v3674_v63 }
 0x1f5   : > { %v1862_v55 = vpack.c.bf16 %v1853_v52, %v1852_v51  ;;  %3107 = vmatprep.subr.bf16.mxu0 %v3675_v57  ;;  %3394 = vmatpush3.bf16.msra.mxu1 %v3684_v8 }
 0x1f6   : > { %3395 = vmatprep.subr.bf16.mxu1 %v3685_v9 }
 0x1f7   : > { %3379 = vmatprep.mubr.bf16.mxu1 %v1862_v55 }
 0x1f8   : > { %3380 = vmatmul.mubr.bf16.gmra.mxu1 %v1863_v56  ;;  %3108 = vmatpush3.bf16.msra.mxu0 %v3676_v0 }
 0x1f9   : > { %3109 = vmatprep.subr.bf16.mxu0 %v3677_v1  ;;  %3396 = vmatpush3.bf16.msra.mxu1 %v3685_v9 }
 0x1fa   : > { %3397 = vmatprep.subr.bf16.mxu1 %v3686_v10 }
 0x1fc   : > { %3110 = vmatpush3.bf16.msra.mxu0 %v3678_v2 }
 0x1fd   : > { %3398 = vmatpush3.bf16.msra.mxu1 %v3686_v10 }
 0x260   : > { %v4430_v11 = vpop.f32.mrf.mxu1 }
 0x261   : > { %v1091_v56 = vmul.f32 %v4430_v11, %v4450_v24  ;;  %vm1074_vm9 = vcmp.gt.f32.partialorder %v4430_v11, 0.0 }
 0x262   : > { %v1009_v12 = vpop.f32.mrf.mxu1 }
 0x263   : > { %v1089_v39 = vmul.f32 %v4450_v24, %v1009_v12  ;;  %vm1072_vm5 = vcmp.gt.f32.partialorder %v1009_v12, 0.0  ;;  %v1107_v57 = vsel %vm1074_vm9, %v4430_v11, %v1091_v56 }
 0x264   : > { %v4432_v13 = vpop.f32.mrf.mxu1 }
 0x265   : > { %v1105_v48 = vsel %vm1072_vm5, %v1009_v12, %v1089_v39  ;;  %v1092_v53 = vmul.f32 %v4432_v13, %v4450_v24  ;;  %vm1075_vm8 = vcmp.gt.f32.partialorder %v4432_v13, 0.0 }
 0x266   : > { %v1012_v14 = vpop.f32.mrf.mxu1 }
 0x267   : > { %v1090_v35 = vmul.f32 %v4450_v24, %v1012_v14  ;;  %vm1073_vm2 = vcmp.gt.f32.partialorder %v1012_v14, 0.0  ;;  %v1108_v59 = vsel %vm1075_vm8, %v4432_v13, %v1092_v53 }
 0x268   : > { %v4434_v15 = vpop.f32.mrf.mxu1  ;;  %v1122_v2 = vpack.c.bf16 %v1108_v59, %v1107_v57 }
 0x269   : > { %v1106_v43 = vsel %vm1073_vm2, %v1012_v14, %v1090_v35  ;;  %vm1078_vm2 = vcmp.gt.f32.partialorder %v4434_v15, 0.0 }
 0x26a   : > { %v4436_v16 = vpop.f32.mrf.mxu1  ;;  %v1121_v51 = vpack.c.bf16 %v1106_v43, %v1105_v48 }
 0x26b   : > { %v1093_v7 = vmul.f32 %v4450_v24, %v4436_v16  ;;  %vm1076_vm14 = vcmp.gt.f32.partialorder %v4436_v16, 0.0 }
 0x26c   : > { %v4438_v17 = vpop.f32.mrf.mxu1 }
 0x26d   : > { %v1109_v13 = vsel %vm1076_vm14, %v4436_v16, %v1093_v7 }
 0x26e   : > { %v4440_v18 = vpop.f32.mrf.mxu1 }
 0x26f   : > { %v1094_v3 = vmul.f32 %v4450_v24, %v4440_v18  ;;  %vm1077_vm12 = vcmp.gt.f32.partialorder %v4440_v18, 0.0 }
 0x270   : > { %v4442_v19 = vpop.f32.mrf.mxu1 }
 0x271   : > { %v1110_v10 = vsel %vm1077_vm12, %v4440_v18, %v1094_v3  ;;  %vm1082_vm12 = vcmp.gt.f32.partialorder %v4442_v19, 0.0 }
 0x272   : > { %v4444_v20 = vpop.f32.mrf.mxu1 }
 0x274   : > { %v4446_v21 = vpop.f32.mrf.mxu1 }
 0x276   : > { %v4448_v22 = vpop.f32.mrf.mxu1 }
 0x277   : > { %vm1081_vm5 = vcmp.gt.f32.partialorder %v4448_v22, 0.0  ;;  %v1098_v43 = vmul.f32 %v4450_v24, %v4448_v22 }
 0x278   : > { %v3253_v23 = vpop.f32.mrf.mxu1 }
 0x279   : > { %v1103_v26 = vmul.f32 %v3253_v23, %v4450_v24  ;;  %vm1086_vm0 = vcmp.gt.f32.partialorder %v3253_v23, 0.0 }
 0x27a   : > { %v4452_v25 = vpop.f32.mrf.mxu1 }
 0x27b   : > { %v4458_v30 = vsel %vm1086_vm0, %v3253_v23, %v1103_v26  ;;  %v1123_v26 = vpack.c.bf16 %v1110_v10, %v1109_v13  ;;  %vm1079_vm0 = vcmp.gt.f32.partialorder %v4438_v17, 0.0 }
 0x27c   : > { %v3254_v27 = vpop.f32.mrf.mxu1 }
 0x27d   : > { %vm1087_vm1 = vcmp.gt.f32.partialorder %v3254_v27, 0.0  ;;  %v1104_v28 = vmul.f32 %v3254_v27, %v4450_v24 }
 0x27e   : > { %v4456_v29 = vpop.f32.mrf.mxu1 }
 0x27f   : > { %v4460_v31 = vsel %vm1087_vm1, %v3254_v27, %v1104_v28  ;;  %v1096_v27 = vmul.f32 %v4438_v17, %v4450_v24 }
 0x280   : > { %v3305_v32 = vpop.f32.mrf.mxu1  ;;  %v1128_v33 = vpack.c.bf16 %v4460_v31, %v4458_v30  ;;  %v3693_v30 = vld [vmem:[#allocation21 + $0x8] sm:$0xff]   ;;  %v3694_v31 = vld [vmem:[#allocation21] sm:$0xff]  }
 0x281   : > { %v1559_v41 = vmul.f32 %v3305_v32, %v4450_v24  ;;  %vm1543_vm7 = vcmp.gt.f32.partialorder %v3305_v32, 0.0 }
 0x282   : > { %v1478_v34 = vpop.f32.mrf.mxu1 }
 0x283   : > { %v1557_v37 = vmul.f32 %v1478_v34, %v4450_v24  ;;  %vm1541_vm3 = vcmp.gt.f32.partialorder %v1478_v34, 0.0  ;;  %v1575_v52 = vsel %vm1543_vm7, %v3305_v32, %v1559_v41 }
 0x284   : > { %v3306_v36 = vpop.f32.mrf.mxu1 }
 0x285   : > { %v1560_v38 = vmul.f32 %v3306_v36, %v4450_v24  ;;  %vm1544_vm4 = vcmp.gt.f32.partialorder %v3306_v36, 0.0  ;;  %v1573_v45 = vsel %vm1541_vm3, %v1478_v34, %v1557_v37  ;;  %v1095_v34 = vmul.f32 %v4434_v15, %v4450_v24 }
 0x286   : > { %v1481_v40 = vpop.f32.mrf.mxu1 }
 0x287   : > { %vm1542_vm6 = vcmp.gt.f32.partialorder %v1481_v40, 0.0  ;;  %v1558_v42 = vmul.f32 %v1481_v40, %v4450_v24  ;;  %v1576_v46 = vsel %vm1544_vm4, %v3306_v36, %v1560_v38  ;;  %v1112_v36 = vsel %vm1079_vm0, %v4438_v17, %v1096_v27 }
 0x288   : > { %v3309_v44 = vpop.f32.mrf.mxu1  ;;  %v1590_v55 = vpack.c.bf16 %v1576_v46, %v1575_v52  ;;  %v1111_v39 = vsel %vm1078_vm2, %v4434_v15, %v1095_v34  ;;  %vm1080_vm4 = vcmp.gt.f32.partialorder %v4444_v20, 0.0  ;;  %v1114_v52 = vsel %vm1081_vm5, %v4448_v22, %v1098_v43 }
 0x289   : > { %v1574_v47 = vsel %vm1542_vm6, %v1481_v40, %v1558_v42  ;;  %v1563_v9 = vmul.f32 %v3309_v44, %v4450_v24  ;;  %vm1547_vm15 = vcmp.gt.f32.partialorder %v3309_v44, 0.0  ;;  %v1124_v42 = vpack.c.bf16 %v1112_v36, %v1111_v39 }
 0x28a   : > { %v1494_v49 = vpop.f32.mrf.mxu1  ;;  %v1589_v50 = vpack.c.bf16 %v1574_v47, %v1573_v45  ;;  %v1097_v47 = vmul.f32 %v4450_v24, %v4444_v20  ;;  %v1100_v22 = vmul.f32 %v4446_v21, %v4450_v24  ;;  %vm1085_vm5 = vcmp.gt.f32.partialorder %v4456_v29, 0.0 }
 0x28b   : > { %v1561_v61 = vmul.f32 %v1494_v49, %v4450_v24  ;;  %vm1545_vm11 = vcmp.gt.f32.partialorder %v1494_v49, 0.0  ;;  %v1579_v23 = vsel %vm1547_vm15, %v3309_v44, %v1563_v9 }
 0x28c   : > { %v3310_v54 = vpop.f32.mrf.mxu1  ;;  %2305 = vmatprep.mubr.bf16.mxu0 %v1589_v50 }
 0x28d   : > { %2306 = vmatmul.mubr.bf16.vlgmr.msra.gmra.mxu0 %v1121_v51  ;;  %v1577_v1 = vsel %vm1545_vm11, %v1494_v49, %v1561_v61  ;;  %v1564_v6 = vmul.f32 %v3310_v54, %v4450_v24  ;;  %vm1548_vm13 = vcmp.gt.f32.partialorder %v3310_v54, 0.0  ;;  %v1113_v61 = vsel %vm1080_vm4, %v4444_v20, %v1097_v47 }
 0x28e   : > { %v1497_v58 = vpop.f32.mrf.mxu1  ;;  %2313 = vmatprep.mubr.bf16.mxu0 %v1590_v55  ;;  %vm1084_vm4 = vcmp.gt.f32.partialorder %v4452_v25, 0.0 }
 0x28f   : > { %vm1546_vm10 = vcmp.gt.f32.partialorder %v1497_v58, 0.0  ;;  %v1562_v62 = vmul.f32 %v1497_v58, %v4450_v24  ;;  %v1580_v12 = vsel %vm1548_vm13, %v3310_v54, %v1564_v6  ;;  %vm1083_vm13 = vcmp.gt.f32.partialorder %v4446_v21, 0.0 }
 0x290   : > { %v4479_v60 = vpop.f32.mrf.mxu1  ;;  %v1592_v32 = vpack.c.bf16 %v1580_v12, %v1579_v23  ;;  %v1116_v10 = vsel %vm1083_vm13, %v4446_v21, %v1100_v22 }
 0x291   : > { %v1578_v63 = vsel %vm1546_vm10, %v1497_v58, %v1562_v62  ;;  %v1567_v50 = vmul.f32 %v4479_v60, %v4450_v24  ;;  %vm1551_vm11 = vcmp.gt.f32.partialorder %v4479_v60, 0.0 }
 0x292   : > { %v1510_v0 = vpop.f32.mrf.mxu1  ;;  %v1591_v5 = vpack.c.bf16 %v1578_v63, %v1577_v1  ;;  %v1125_v1 = vpack.c.bf16 %v1114_v52, %v1113_v61 }
 0x293   : > { %v1565_v35 = vmul.f32 %v1510_v0, %v4450_v24  ;;  %vm1549_vm3 = vcmp.gt.f32.partialorder %v1510_v0, 0.0  ;;  %v1583_v57 = vsel %vm1551_vm11, %v4479_v60, %v1567_v50 }
 0x294   : > { %v4484_v4 = vpop.f32.mrf.mxu1 }
 0x295   : > { %2314 = vmatmul.mubr.bf16.gmra.mxu0 %v1122_v2  ;;  %v1581_v41 = vsel %vm1549_vm3, %v1510_v0, %v1565_v35  ;;  %v1568_v17 = vmul.f32 %v4484_v4, %v4450_v24  ;;  %vm1552_vm7 = vcmp.gt.f32.partialorder %v4484_v4, 0.0 }
 0x296   : > { %v1513_v8 = vpop.f32.mrf.mxu1  ;;  %2321 = vmatprep.mubr.bf16.mxu0 %v1591_v5  ;;  %v1099_v5 = vmul.f32 %v4442_v19, %v4450_v24 }
 0x297   : > { %v1566_v18 = vmul.f32 %v1513_v8, %v4450_v24  ;;  %vm1550_vm1 = vcmp.gt.f32.partialorder %v1513_v8, 0.0  ;;  %v1584_v55 = vsel %vm1552_vm7, %v4484_v4, %v1568_v17 }
 0x298   : > { %v4493_v11 = vpop.f32.mrf.mxu1  ;;  %v1594_v3 = vpack.c.bf16 %v1584_v55, %v1583_v57 }
 0x299   : > { %v1582_v38 = vsel %vm1550_vm1, %v1513_v8, %v1566_v18  ;;  %vm1555_vm11 = vcmp.gt.f32.partialorder %v4493_v11, 0.0 }
 0x29a   : > { %v4496_v14 = vpop.f32.mrf.mxu1  ;;  %v1593_v45 = vpack.c.bf16 %v1582_v38, %v1581_v41  ;;  %v1101_v41 = vmul.f32 %v4450_v24, %v4452_v25 }
 0x29b   : > { %v1569_v8 = vmul.f32 %v4496_v14, %v4450_v24  ;;  %vm1553_vm3 = vcmp.gt.f32.partialorder %v4496_v14, 0.0 }
 0x29c   : > { %v4500_v28 = vpop.f32.mrf.mxu1  ;;  %v1117_v50 = vsel %vm1084_vm4, %v4452_v25, %v1101_v41 }
 0x29d   : > { %2322 = vmatmul.mubr.bf16.gmra.mxu0 %v1123_v26  ;;  %v1585_v36 = vsel %vm1553_vm3, %v4496_v14, %v1569_v8  ;;  %vm1556_vm7 = vcmp.gt.f32.partialorder %v4500_v28, 0.0 }
 0x29e   : > { %v4506_v16 = vpop.f32.mrf.mxu1  ;;  %2329 = vmatprep.mubr.bf16.mxu0 %v1592_v32  ;;  %v1115_v32 = vsel %vm1082_vm12, %v4442_v19, %v1099_v5  ;;  %v1572_v19 = vmul.f32 %v4500_v28, %v4450_v24 }
 0x29f   : > { %v1570_v20 = vmul.f32 %v4506_v16, %v4450_v24  ;;  %vm1554_vm15 = vcmp.gt.f32.partialorder %v4506_v16, 0.0 }
 0x2a0   : > { %v3369_v37 = vpop.f32.mrf.mxu1  ;;  %v1588_v47 = vsel %vm1556_vm7, %v4500_v28, %v1572_v19 }
 0x2a1   : > { %v2043_v48 = vmul.f32 %v3369_v37, %v4450_v24  ;;  %vm2027_vm9 = vcmp.gt.f32.partialorder %v3369_v37, 0.0  ;;  %v1586_v23 = vsel %vm1554_vm15, %v4506_v16, %v1570_v20  ;;  %v1102_v16 = vmul.f32 %v4450_v24, %v4456_v29  ;;  %v3689_v20 = vld [vmem:[#allocation21 + $0x28] sm:$0xff]  }
 0x2a2   : > { %v1962_v40 = vpop.f32.mrf.mxu1  ;;  %v1595_v39 = vpack.c.bf16 %v1586_v23, %v1585_v36 }
 0x2a3   : > { %v2041_v46 = vmul.f32 %v1962_v40, %v4450_v24  ;;  %vm2025_vm8 = vcmp.gt.f32.partialorder %v1962_v40, 0.0  ;;  %v2059_v62 = vsel %vm2027_vm9, %v3369_v37, %v2043_v48  ;;  %v1126_v37 = vpack.c.bf16 %v1116_v10, %v1115_v32 }
 0x2a4   : > { %v3370_v44 = vpop.f32.mrf.mxu1  ;;  %v1118_v17 = vsel %vm1085_vm5, %v4456_v29, %v1102_v16 }
 0x2a5   : > { %vm2028_vm6 = vcmp.gt.f32.partialorder %v3370_v44, 0.0  ;;  %v2044_v15 = vmul.f32 %v3370_v44, %v4450_v24  ;;  %2330 = vmatmul.mubr.bf16.gmra.mxu0 %v1124_v42  ;;  %v2057_v56 = vsel %vm2025_vm8, %v1962_v40, %v2041_v46  ;;  %v1127_v55 = vpack.c.bf16 %v1118_v17, %v1117_v50 }
 0x2a6   : > { %v1965_v49 = vpop.f32.mrf.mxu1  ;;  %2337 = vmatprep.mubr.bf16.mxu0 %v1593_v45 }
 0x2a7   : > { %vm2026_vm10 = vcmp.gt.f32.partialorder %v1965_v49, 0.0  ;;  %v2042_v51 = vmul.f32 %v1965_v49, %v4450_v24  ;;  %v2060_v53 = vsel %vm2028_vm6, %v3370_v44, %v2044_v15  ;;  %v1571_v44 = vmul.f32 %v4493_v11, %v4450_v24 }
 0x2a8   : > { %v3373_v54 = vpop.f32.mrf.mxu1  ;;  %v2074_v0 = vpack.c.bf16 %v2060_v53, %v2059_v62 }
 0x2a9   : > { %v2058_v58 = vsel %vm2026_vm10, %v1965_v49, %v2042_v51  ;;  %v2047_v6 = vmul.f32 %v3373_v54, %v4450_v24  ;;  %vm2031_vm1 = vcmp.gt.f32.partialorder %v3373_v54, 0.0 }
 0x2aa   : > { %v1978_v59 = vpop.f32.mrf.mxu1  ;;  %v2073_v63 = vpack.c.bf16 %v2058_v58, %v2057_v56 }
 0x2ab   : > { %v2045_v4 = vmul.f32 %v1978_v59, %v4450_v24  ;;  %vm2029_vm0 = vcmp.gt.f32.partialorder %v1978_v59, 0.0  ;;  %v2063_v18 = vsel %vm2031_vm1, %v3373_v54, %v2047_v6  ;;  %v1587_v54 = vsel %vm1555_vm11, %v4493_v11, %v1571_v44 }
 0x2ac   : > { %v3374_v2 = vpop.f32.mrf.mxu1  ;;  %3399 = vmatprep.mubr.bf16.mxu1 %v2073_v63  ;;  %v1596_v58 = vpack.c.bf16 %v1588_v47, %v1587_v54 }
 0x2ad   : > { %vm2032_vm14 = vcmp.gt.f32.partialorder %v3374_v2, 0.0  ;;  %v2048_v60 = vmul.f32 %v3374_v2, %v4450_v24  ;;  %2338 = vmatmul.mubr.bf16.gmra.mxu0 %v1125_v1  ;;  %3400 = vmatmul.mubr.bf16.vlgmr.msra.gmra.mxu1 %v2074_v0  ;;  %v2061_v26 = vsel %vm2029_vm0, %v1978_v59, %v2045_v4  ;;  %v3691_v4 = vld [vmem:[#allocation21 + $0x18] sm:$0xff]  }
 0x2ae   : > { %v1981_v7 = vpop.f32.mrf.mxu1  ;;  %2345 = vmatprep.mubr.bf16.mxu0 %v1594_v3  ;;  %v3688_v3 = vld [vmem:[#allocation21 + $0x30] sm:$0xff]  }
 0x2af   : > { %vm2030_vm2 = vcmp.gt.f32.partialorder %v1981_v7, 0.0  ;;  %v2046_v9 = vmul.f32 %v1981_v7, %v4450_v24  ;;  %v2064_v12 = vsel %vm2032_vm14, %v3374_v2, %v2048_v60  ;;  %v3687_v2 = vld [vmem:[#allocation21 + $0x38] sm:$0xff]   ;;  %v3692_v60 = vld [vmem:[#allocation21 + $0x10] sm:$0xff]  }
 0x2b0   : > { %v3377_v13 = vpop.f32.mrf.mxu1  ;;  %v2076_v21 = vpack.c.bf16 %v2064_v12, %v2063_v18  ;;  %3415 = vmatprep.subr.bf16.mxu1 %v3687_v2 }
 0x2b1   : > { %v2062_v27 = vsel %vm2030_vm2, %v1981_v7, %v2046_v9  ;;  %v2051_v42 = vmul.f32 %v3377_v13, %v4450_v24  ;;  %vm2035_vm9 = vcmp.gt.f32.partialorder %v3377_v13, 0.0  ;;  %3416 = vmatpush3.bf16.msra.mxu1 %v3687_v2 }
 0x2b2   : > { %v1994_v34 = vpop.f32.mrf.mxu1  ;;  %v2075_v35 = vpack.c.bf16 %v2062_v27, %v2061_v26  ;;  %3417 = vmatprep.subr.bf16.mxu1 %v3688_v3 }
 0x2b3   : > { %v2049_v40 = vmul.f32 %v1994_v34, %v4450_v24  ;;  %vm2033_vm8 = vcmp.gt.f32.partialorder %v1994_v34, 0.0  ;;  %v2067_v51 = vsel %vm2035_vm9, %v3377_v13, %v2051_v42 }
 0x2b4   : > { %v3378_v38 = vpop.f32.mrf.mxu1  ;;  %3403 = vmatprep.mubr.bf16.mxu1 %v2075_v35 }
 0x2b5   : > { %vm2036_vm6 = vcmp.gt.f32.partialorder %v3378_v38, 0.0  ;;  %v2052_v14 = vmul.f32 %v3378_v38, %v4450_v24  ;;  %2346 = vmatmul.mubr.bf16.gmra.mxu0 %v1126_v37  ;;  %3404 = vmatmul.mubr.bf16.gmra.mxu1 %v2076_v21  ;;  %v2065_v48 = vsel %vm2033_vm8, %v1994_v34, %v2049_v40 }
 0x2b6   : > { %v1997_v43 = vpop.f32.mrf.mxu1  ;;  %2353 = vmatprep.mubr.bf16.mxu0 %v1595_v39  ;;  %3418 = vmatpush3.bf16.msra.mxu1 %v3688_v3 }
 0x2b7   : > { %vm2034_vm10 = vcmp.gt.f32.partialorder %v1997_v43, 0.0  ;;  %v2050_v45 = vmul.f32 %v1997_v43, %v4450_v24  ;;  %v2068_v46 = vsel %vm2036_vm6, %v3378_v38, %v2052_v14  ;;  %3419 = vmatprep.subr.bf16.mxu1 %v3689_v20 }
 0x2b8   : > { %v3381_v15 = vpop.f32.mrf.mxu1  ;;  %v2078_v29 = vpack.c.bf16 %v2068_v46, %v2067_v51 }
 0x2b9   : > { %v2066_v49 = vsel %vm2034_vm10, %v1997_v43, %v2050_v45  ;;  %v2055_v62 = vmul.f32 %v3381_v15, %v4450_v24  ;;  %vm2039_vm14 = vcmp.gt.f32.partialorder %v3381_v15, 0.0  ;;  %v4593_v45 = vstv %s2467_s21 }
 0x2ba   : > { %v2010_v52 = vpop.f32.mrf.mxu1  ;;  %v2077_v53 = vpack.c.bf16 %v2066_v49, %v2065_v48  ;;  %3420 = vmatpush3.bf16.msra.mxu1 %v3689_v20 }
 0x2bb   : > { %v2053_v61 = vmul.f32 %v2010_v52, %v4450_v24  ;;  %vm2037_vm13 = vcmp.gt.f32.partialorder %v2010_v52, 0.0  ;;  %v2071_v0 = vsel %vm2039_vm14, %v3381_v15, %v2055_v62 }
 0x2bc   : > { %v3382_v56 = vpop.f32.mrf.mxu1  ;;  %3407 = vmatprep.mubr.bf16.mxu1 %v2077_v53 }
 0x2bd   : > { %vm2040_vm12 = vcmp.gt.f32.partialorder %v3382_v56, 0.0  ;;  %v2056_v28 = vmul.f32 %v3382_v56, %v4450_v24  ;;  %2354 = vmatmul.mubr.bf16.gmra.mxu0 %v1127_v55  ;;  %3408 = vmatmul.mubr.bf16.gmra.mxu1 %v2078_v29  ;;  %v2069_v63 = vsel %vm2037_vm13, %v2010_v52, %v2053_v61 }
 0x2be   : > { %v2013_v25 = vpop.f32.mrf.mxu1  ;;  %2361 = vmatprep.mubr.bf16.mxu0 %v1596_v58 }
 0x2bf   : > { %vm2038_vm15 = vcmp.gt.f32.partialorder %v2013_v25, 0.0  ;;  %v2054_v11 = vmul.f32 %v2013_v25, %v4450_v24  ;;  %v2072_v59 = vsel %vm2040_vm12, %v3382_v56, %v2056_v28  ;;  %v3690_v24 = vld [vmem:[#allocation21 + $0x20] sm:$0xff]  }
 0x2c0   : > { %v2080_v22 = vpack.c.bf16 %v2072_v59, %v2071_v0  ;;  %3421 = vmatprep.subr.bf16.mxu1 %v3690_v24 }
 0x2c1   : > { %v2070_v57 = vsel %vm2038_vm15, %v2013_v25, %v2054_v11  ;;  %3422 = vmatpush3.bf16.msra.mxu1 %v3690_v24 }
 0x2c2   : > { %v2079_v1 = vpack.c.bf16 %v2070_v57, %v2069_v63  ;;  %3423 = vmatprep.subr.bf16.mxu1 %v3691_v4 }
 0x2c4   : > { %3411 = vmatprep.mubr.bf16.mxu1 %v2079_v1 }
 0x2c5   : > { %2362 = vmatmul.mubr.bf16.gmra.mxu0 %v1128_v33  ;;  %3412 = vmatmul.mubr.bf16.gmra.mxu1 %v2080_v22 }
 0x2c6   : > { %3424 = vmatpush3.bf16.msra.mxu1 %v3691_v4 }
 0x2c7   : > { %3425 = vmatprep.subr.bf16.mxu1 %v3692_v60 }
 0x2ca   : > { %3426 = vmatpush3.bf16.msra.mxu1 %v3692_v60 }
 0x2cb   : > { %3427 = vmatprep.subr.bf16.mxu1 %v3693_v30 }
 0x2ce   : > { %3428 = vmatpush3.bf16.msra.mxu1 %v3693_v30 }
 0x2cf   : > { %3429 = vmatprep.subr.bf16.mxu1 %v3694_v31 }
 0x2d2   : > { %3430 = vmatpush3.bf16.msra.mxu1 %v3694_v31 }
 0x34d   : > { %v3111_v33 = vpop.f32.mrf.mxu0 }
 0x34f   : > { %v3112_v5 = vpop.f32.mrf.mxu0 }
 0x350   : > { %v3113_v21 = vadd.f32 %v3112_v5, %v3111_v33 }
 0x351   : > { %v3114_v6 = vpop.f32.mrf.mxu0 }
 0x353   : > { %v3115_v7 = vpop.f32.mrf.mxu0 }
 0x354   : > { %v3116_v42 = vadd.f32 %v3115_v7, %v3114_v6 }
 0x355   : > { %v3117_v8 = vpop.f32.mrf.mxu0 }
 0x357   : > { %v3118_v9 = vpop.f32.mrf.mxu0 }
 0x358   : > { %v3119_v39 = vadd.f32 %v3118_v9, %v3117_v8 }
 0x359   : > { %v3120_v10 = vpop.f32.mrf.mxu0 }
 0x35b   : > { %v3121_v12 = vpop.f32.mrf.mxu0 }
 0x35c   : > { %v3122_v19 = vadd.f32 %v3121_v12, %v3120_v10 }
 0x35d   : > { %v3123_v13 = vpop.f32.mrf.mxu0 }
 0x35f   : > { %v3124_v23 = vpop.f32.mrf.mxu0 }
 0x360   : > { %v3125_v53 = vadd.f32 %v3124_v23, %v3123_v13 }
 0x361   : > { %v3126_v26 = vpop.f32.mrf.mxu0 }
 0x363   : > { %v3127_v27 = vpop.f32.mrf.mxu0 }
 0x364   : > { %v3128_v61 = vadd.f32 %v3127_v27, %v3126_v26 }
 0x365   : > { %v3129_v32 = vpop.f32.mrf.mxu0 }
 0x367   : > { %v3130_v18 = vpop.f32.mrf.mxu0 }
 0x368   : > { %v3131_v29 = vadd.f32 %v3130_v18, %v3129_v32 }
 0x369   : > { %v3132_v34 = vpop.f32.mrf.mxu0 }
 0x36b   : > { %v3133_v35 = vpop.f32.mrf.mxu0 }
 0x36c   : > { %v3134_v56 = vadd.f32 %v3133_v35, %v3132_v34 }
 0x36d   : > { %v3135_v36 = vpop.f32.mrf.mxu0  ;;  %v3401_v37 = vpop.f32.mrf.mxu1 }
 0x36e   : > { %v2413_v43 = vadd.f32 %v3401_v37, %v3119_v39 }
 0x36f   : > { %v3136_v16 = vpop.f32.mrf.mxu0  ;;  %v2404_v38 = vpop.f32.mrf.mxu1 }
 0x370   : > { %v2405_v40 = vadd.f32 %v3113_v21, %v2404_v38  ;;  %v2487_v51 = vmul.f32 %v4593_v45, %v2413_v43  ;;  %vm2470_vm3 = vcmp.gt.f32.partialorder %v2413_v43, 0.0  ;;  %v3137_v4 = vadd.f32 %v3136_v16, %v3135_v36 }
 0x371   : > { %v3138_v14 = vpop.f32.mrf.mxu0  ;;  %v3402_v41 = vpop.f32.mrf.mxu1 }
 0x372   : > { %v2416_v44 = vadd.f32 %v3402_v41, %v3122_v19  ;;  %v2485_v48 = vmul.f32 %v4593_v45, %v2405_v40  ;;  %vm2468_vm1 = vcmp.gt.f32.partialorder %v2405_v40, 0.0  ;;  %v2503_v63 = vsel %vm2470_vm3, %v2413_v43, %v2487_v51 }
 0x373   : > { %v3139_v17 = vpop.f32.mrf.mxu0  ;;  %v2407_v46 = vpop.f32.mrf.mxu1 }
 0x374   : > { %v2488_v15 = vmul.f32 %v4593_v45, %v2416_v44  ;;  %v2408_v47 = vadd.f32 %v3116_v42, %v2407_v46  ;;  %vm2471_vm0 = vcmp.gt.f32.partialorder %v2416_v44, 0.0  ;;  %v2501_v11 = vsel %vm2468_vm1, %v2405_v40, %v2485_v48 }
 0x375   : > { %v3141_v49 = vpop.f32.mrf.mxu0  ;;  %v3405_v50 = vpop.f32.mrf.mxu1  ;;  %v3140_v13 = vadd.f32 %v3139_v17, %v3138_v14 }
 0x376   : > { %vm2469_vm2 = vcmp.gt.f32.partialorder %v2408_v47, 0.0  ;;  %v2486_v52 = vmul.f32 %v4593_v45, %v2408_v47  ;;  %v2504_v58 = vsel %vm2471_vm0, %v2416_v44, %v2488_v15  ;;  %v2429_v57 = vadd.f32 %v3405_v50, %v3131_v29 }
 0x377   : > { %v3142_v54 = vpop.f32.mrf.mxu0  ;;  %v2420_v55 = vpop.f32.mrf.mxu1  ;;  %v2518_v22 = vpack.c.bf16 %v2504_v58, %v2503_v63 }
 0x378   : > { %v2421_v28 = vadd.f32 %v3125_v53, %v2420_v55  ;;  %v2502_v59 = vsel %vm2469_vm2, %v2408_v47, %v2486_v52  ;;  %v2491_v33 = vmul.f32 %v4593_v45, %v2429_v57  ;;  %vm2474_vm7 = vcmp.gt.f32.partialorder %v2429_v57, 0.0 }
 0x379   : > { %v3144_v62 = vpop.f32.mrf.mxu0  ;;  %v3406_v25 = vpop.f32.mrf.mxu1  ;;  %v2517_v1 = vpack.c.bf16 %v2502_v59, %v2501_v11  ;;  %v3143_v8 = vadd.f32 %v3142_v54, %v3141_v49 }
 0x37a   : > { %v2432_v0 = vadd.f32 %v3406_v25, %v3134_v56  ;;  %v2489_v60 = vmul.f32 %v4593_v45, %v2421_v28  ;;  %vm2472_vm5 = vcmp.gt.f32.partialorder %v2421_v28, 0.0  ;;  %v2507_v36 = vsel %vm2474_vm7, %v2429_v57, %v2491_v33 }
 0x37b   : > { %v3145_v2 = vpop.f32.mrf.mxu0  ;;  %v2423_v3 = vpop.f32.mrf.mxu1  ;;  %3431 = vmatprep.mubr.bf16.mxu1 %v2517_v1 }
 0x37c   : > { %v2492_v20 = vmul.f32 %v4593_v45, %v2432_v0  ;;  %v2424_v24 = vadd.f32 %v3128_v61, %v2423_v3  ;;  %vm2475_vm4 = vcmp.gt.f32.partialorder %v2432_v0, 0.0  ;;  %3432 = vmatmul.mubr.bf16.vlgmr.msra.gmra.mxu1 %v2518_v22  ;;  %v3146_v9 = vadd.f32 %v3145_v2, %v3144_v62 }
 0x37d   : > { %v3147_v30 = vpop.f32.mrf.mxu0  ;;  %v3409_v31 = vpop.f32.mrf.mxu1  ;;  %v2505_v27 = vsel %vm2472_vm5, %v2421_v28, %v2489_v60 }
 0x37e   : > { %vm2473_vm6 = vcmp.gt.f32.partialorder %v2424_v24, 0.0  ;;  %v2490_v5 = vmul.f32 %v4593_v45, %v2424_v24  ;;  %v2508_v12 = vsel %vm2475_vm4, %v2432_v0, %v2492_v20  ;;  %v2445_v18 = vadd.f32 %v3409_v31, %v3143_v8 }
 0x37f   : > { %v3148_v6 = vpop.f32.mrf.mxu0  ;;  %v2436_v7 = vpop.f32.mrf.mxu1  ;;  %v2520_v38 = vpack.c.bf16 %v2508_v12, %v2507_v36 }
 0x380   : > { %v2437_v10 = vadd.f32 %v3137_v4, %v2436_v7  ;;  %v2506_v32 = vsel %vm2473_vm6, %v2424_v24, %v2490_v5  ;;  %v2495_v41 = vmul.f32 %v4593_v45, %v2445_v18  ;;  %v3149_v42 = vadd.f32 %v3148_v6, %v3147_v30 }
 0x381   : > { %v3150_v23 = vpop.f32.mrf.mxu0  ;;  %v3410_v26 = vpop.f32.mrf.mxu1  ;;  %v2519_v35 = vpack.c.bf16 %v2506_v32, %v2505_v27  ;;  %vm2478_vm11 = vcmp.gt.f32.partialorder %v2445_v18, 0.0 }
 0x382   : > { %v2448_v34 = vadd.f32 %v3410_v26, %v3146_v9  ;;  %v2493_v37 = vmul.f32 %v4593_v45, %v2437_v10  ;;  %vm2476_vm8 = vcmp.gt.f32.partialorder %v2437_v10, 0.0  ;;  %v2511_v55 = vsel %vm2478_vm11, %v2445_v18, %v2495_v41 }
 0x383   : > { %v3151_v21 = vpop.f32.mrf.mxu0  ;;  %v2439_v16 = vpop.f32.mrf.mxu1  ;;  %3435 = vmatprep.mubr.bf16.mxu1 %v2519_v35 }
 0x384   : > { %v2496_v39 = vmul.f32 %v4593_v45, %v2448_v34  ;;  %v2440_v19 = vadd.f32 %v3140_v13, %v2439_v16  ;;  %vm2479_vm9 = vcmp.gt.f32.partialorder %v2448_v34, 0.0  ;;  %3436 = vmatmul.mubr.bf16.gmra.mxu1 %v2520_v38  ;;  %v2509_v46 = vsel %vm2476_vm8, %v2437_v10, %v2493_v37 }
 0x385   : > { %v3153_v40 = vpop.f32.mrf.mxu0  ;;  %v3413_v14 = vpop.f32.mrf.mxu1  ;;  %v3152_v53 = vadd.f32 %v3151_v21, %v3150_v23 }
 0x386   : > { %vm2477_vm10 = vcmp.gt.f32.partialorder %v2440_v19, 0.0  ;;  %v2494_v43 = vmul.f32 %v4593_v45, %v2440_v19  ;;  %v2512_v49 = vsel %vm2479_vm9, %v2448_v34, %v2496_v39 }
 0x387   : > { %v3154_v44 = vpop.f32.mrf.mxu0  ;;  %v2452_v17 = vpop.f32.mrf.mxu1  ;;  %v2522_v58 = vpack.c.bf16 %v2512_v49, %v2511_v55 }
 0x388   : > { %v3155_v15 = vadd.f32 %v3154_v44, %v3153_v40  ;;  %v2453_v47 = vadd.f32 %v3149_v42, %v2452_v17  ;;  %v2510_v48 = vsel %vm2477_vm10, %v2440_v19, %v2494_v43 }
 0x389   : > { %v3156_v50 = vpop.f32.mrf.mxu0  ;;  %v3414_v51 = vpop.f32.mrf.mxu1  ;;  %v2521_v52 = vpack.c.bf16 %v2510_v48, %v2509_v46 }
 0x38a   : > { %v2461_v54 = vadd.f32 %v3413_v14, %v3155_v15  ;;  %v2497_v61 = vmul.f32 %v4593_v45, %v2453_v47  ;;  %vm2480_vm12 = vcmp.gt.f32.partialorder %v2453_v47, 0.0 }
 0x38b   : > { %v3157_v29 = vpop.f32.mrf.mxu0  ;;  %v2455_v56 = vpop.f32.mrf.mxu1  ;;  %3439 = vmatprep.mubr.bf16.mxu1 %v2521_v52 }
 0x38c   : > { %v3158_v28 = vadd.f32 %v3157_v29, %v3156_v50  ;;  %v2456_v62 = vadd.f32 %v3152_v53, %v2455_v56  ;;  %3440 = vmatmul.mubr.bf16.gmra.mxu1 %v2522_v58  ;;  %v2499_v25 = vmul.f32 %v4593_v45, %v2461_v54  ;;  %vm2482_vm14 = vcmp.gt.f32.partialorder %v2461_v54, 0.0 }
 0x38d   : > { %v2513_v57 = vsel %vm2480_vm12, %v2453_v47, %v2497_v61 }
 0x38e   : > { %v2464_v11 = vadd.f32 %v3414_v51, %v3158_v28  ;;  %vm2481_vm13 = vcmp.gt.f32.partialorder %v2456_v62, 0.0  ;;  %v2498_v59 = vmul.f32 %v4593_v45, %v2456_v62  ;;  %v2515_v22 = vsel %vm2482_vm14, %v2461_v54, %v2499_v25 }
 0x390   : > { %vm2483_vm15 = vcmp.gt.f32.partialorder %v2464_v11, 0.0  ;;  %v2500_v63 = vmul.f32 %v4593_v45, %v2464_v11  ;;  %v2514_v0 = vsel %vm2481_vm13, %v2456_v62, %v2498_v59 }
 0x391   : > { %v2523_v1 = vpack.c.bf16 %v2514_v0, %v2513_v57 }
 0x392   : > { %v2516_v2 = vsel %vm2483_vm15, %v2464_v11, %v2500_v63 }
 0x393   : > { %3443 = vmatprep.mubr.bf16.mxu1 %v2523_v1  ;;  %v2524_v3 = vpack.c.bf16 %v2516_v2, %v2515_v22 }
 0x395   : > { %3444 = vmatmul.mubr.bf16.gmra.mxu1 %v2524_v3 }
 0x43c   : > { %v3433_v20 = vpop.f32.mrf.mxu1 }
 0x43d   : > { %2688 = vst [vmem:[%s4612_s13 + $0x10] sm:$0xff] %v3433_v20 }
 0x43e   : > { %v2623_v45 = vpop.f32.mrf.mxu1 }
 0x43f   : > { %2686 = vst [vmem:[%s4612_s13] sm:$0xff] %v2623_v45 }
 0x440   : > { %v3434_v24 = vpop.f32.mrf.mxu1 }
 0x441   : > { %2689 = vst [vmem:[%s4612_s13 + $0x18] sm:$0xff] %v3434_v24 }
 0x442   : > { %v2626_v4 = vpop.f32.mrf.mxu1 }
 0x443   : > { %2687 = vst [vmem:[%s4612_s13 + $0x8] sm:$0xff] %v2626_v4 }
 0x444   : > { %v3437_v60 = vpop.f32.mrf.mxu1 }
 0x445   : > { %2692 = vst [vmem:[%s4612_s13 + $0x30] sm:$0xff] %v3437_v60 }
 0x446   : > { %v2639_v30 = vpop.f32.mrf.mxu1 }
 0x447   : > { %2690 = vst [vmem:[%s4612_s13 + $0x20] sm:$0xff] %v2639_v30 }
 0x448   : > { %v3438_v31 = vpop.f32.mrf.mxu1 }
 0x449   : > { %2693 = vst [vmem:[%s4612_s13 + $0x38] sm:$0xff] %v3438_v31 }
 0x44a   : > { %v2642_v33 = vpop.f32.mrf.mxu1 }
 0x44b   : > { %2691 = vst [vmem:[%s4612_s13 + $0x28] sm:$0xff] %v2642_v33 }
 0x44c   : > { %v3441_v5 = vpop.f32.mrf.mxu1 }
 0x44d   : > { %2696 = vst [vmem:[%s4612_s13 + $0x50] sm:$0xff] %v3441_v5 }
 0x44e   : > { %v2655_v6 = vpop.f32.mrf.mxu1 }
 0x44f   : > { %2694 = vst [vmem:[%s4612_s13 + $0x40] sm:$0xff] %v2655_v6 }
 0x450   : > { %v3442_v7 = vpop.f32.mrf.mxu1 }
 0x451   : > { %2697 = vst [vmem:[%s4612_s13 + $0x58] sm:$0xff] %v3442_v7 }
 0x452   : > { %v2658_v8 = vpop.f32.mrf.mxu1 }
 0x453   : > { %2695 = vst [vmem:[%s4612_s13 + $0x48] sm:$0xff] %v2658_v8 }
 0x455   : > { %v3445_v9 = vpop.f32.mrf.mxu1 }
 0x456   : > { %2700 = vst [vmem:[%s4612_s13 + $0x70] sm:$0xff] %v3445_v9 }
 0x457   : > { %v2671_v10 = vpop.f32.mrf.mxu1 }
 0x458   : > { %2698 = vst [vmem:[%s4612_s13 + $0x60] sm:$0xff] %v2671_v10 }
 0x459   : > { %v3446_v12 = vpop.f32.mrf.mxu1 }
 0x45a   : > { %2701 = vst [vmem:[%s4612_s13 + $0x78] sm:$0xff] %v3446_v12 }
 0x45b   : > { %v2674_v13 = vpop.f32.mrf.mxu1 }
 0x45c   : > { %2699 = vst [vmem:[%s4612_s13 + $0x68] sm:$0xff] %v2674_v13 }
 0x45d   : > { %3944 = shalt.err (!%p3941_p13)
}
 0x45e   : > { %s3945_s29 = scalar_lea.hbm %s4633_s26, 2048  ;;  %s3949_s20 = scalar_lea.hbm %s4692_s14, 4096 }
 0x45f   : > { %p3946_p8 = scmp.ne.s32.totalorder %s4633_s26, %s3945_s29  ;;  %p3950_p11 = scmp.lt.s32.totalorder %s4633_s26, %s4692_s14 }
 0x460   : > { %p3951_p0 = scmp.lt.s32.totalorder %s3949_s20, %s3945_s29 }
 0x461   : > { %p3947_p10 = pnand %p3946_p8, %p4722_p5 }
 0x462   : > { %p3952_p6 = por %p3951_p0, %p3950_p11 }
 0x463   : > { %p3948_p7 = pneg %p3947_p10 }
 0x465   : > { %p3953_p2 = pnand %p3952_p6, %p3948_p7 }
 0x467   : > { %3956 = shalt.err (!%p3953_p2)
}
 0x468   : > { %s4027_s1 = smov 128   ;;  %s4028_s4 = smov 8  }
 0x469   : > { %3484 = dma.vmem_to_hbm [thread:$0]  (%p4722_p5), %s4635_s2, 2048, %s4633_s26, %s2703_s16, %s4027_s1, %s4027_s1, %s4028_s4  }
 0x46a PF: > { %s2731_s17 = sand.u32 1, %s3999_s3   ;;  %p4723_p9 = scmp.ne.s32.totalorder %s4710_s10, 0 }
 0x46b   : > { %p4724_p12 = scmp.ge.s32.totalorder %s4011_s23, 2  ;;  %s2732_s24 = scalar_lea.sflag [#allocation9], %s2731_s17 }
 0x46d   : > { %p3516_p1 = pnand %p4724_p12, %p4723_p9 }
 0x46f   : > { %p3517_p3 = pneg %p3516_p1 }
 0x471   : > { %3994 = dma.done.wait (%p3517_p3), %s2732_s24, 2048  }
 0x472   : > { %3996 = vsyncadd (%p3517_p3), %s2732_s24, 4294965248  ;;  %p36_p4 = scmp.ge.s32.totalorder %s4260_s15, 4   ;;  %s4725_s3 = smov %s4003_s6 }
 0x473   : > { %s4726_s6 = smov %s4007_s9  ;;  %s4727_s9 = smov %s4271_s30 }
 0x474   : > { %s4728_s23 = smov %s4260_s15  ;;  %38 = sbr.rel (!%p36_p4) target bundleno = 18 (0x12), region = 153 }
 0x479   :  { %2737 = vsyncpa [#allocation8], 1 }
 0x47a   :  { %2739 = vsyncpa [#allocation8 + $0x1], 1 }
 0x47b   :  { %2740 = vsyncpa [#allocation11], 1 }
 0x47c   :  { %2741 = vsyncpa [#allocation14], 1 }
 0x47d   :  { %2742 = vsyncpa [#allocation17], 1 }
 0x47e   :  { %2743 = vsyncpa [#allocation20], 1 }
 0x47f   :  { %2744 = vsyncpa [#allocation9], 1 }
 0x480   :  { %2746 = vsyncpa [#allocation9 + $0x1], 1 }

</bundles_post_ra>
